<compile_context>
chip_gen: v6e
topology: v6e:2x2x1
jax: 0.10.0
libtpu: 0.0.40
codegen_flags: <defaults>
</compile_context>

<pallas_src>
import math
import jax
import jax.numpy as jnp
from jax import lax
from jax.experimental import pallas as pl
from jax.experimental.pallas import tpu as pltpu

N_NODES = 8          # graph nodes (e.g. 2 "sentences" of 4 tokens)
HIDDEN = 32          # config.hidden_size
HEADS = 4            # config.num_attention_heads
HEAD_DIM = HIDDEN // HEADS
INTER = 64           # config.intermediate_size
N_LAYERS = 2         # config.num_hidden_layers
LN_EPS = 1e-12

# rows of the packed per-layer vector-parameter block ([8, 128], zero padded)
_ROW_BQKV, _ROW_BAO, _ROW_G1, _ROW_B1, _ROW_BI, _ROW_BO, _ROW_G2, _ROW_B2 = range(8)


def _layernorm(x, gamma, beta):
    mean = jnp.mean(x, axis=-1, keepdims=True)
    var = jnp.mean((x - mean) ** 2, axis=-1, keepdims=True)
    return (x - mean) * lax.rsqrt(var + LN_EPS) * gamma + beta


def bert_encoder_kernel(h_ref, adj_ref, wqkv_ref, wao_ref, wi_ref, wo_ref,
                        vecs_ref, out_ref):
    h = h_ref[...].astype(jnp.float32)                  # [N, H]
    adj = adj_ref[...].astype(jnp.float32)              # [N, N]  adj[dst, src]
    neg_bias = (1.0 - adj) * jnp.float32(-1e30)         # mask for non-edges

    n_layers = wqkv_ref.shape[0]
    for l in range(n_layers):                           # unrolled layer loop
        wqkv = wqkv_ref[l]                              # [H, 3H]  (wq|wk|wv)
        wao = wao_ref[l]                                # [H, H]
        wi = wi_ref[l]                                  # [H, INTER]
        wo = wo_ref[l]                                  # [INTER, H]
        vecs = vecs_ref[l]                              # [8, 128] packed vectors

        bqkv = vecs[_ROW_BQKV:_ROW_BQKV + 1, :3 * HIDDEN]
        bao = vecs[_ROW_BAO:_ROW_BAO + 1, :HIDDEN]
        g1 = vecs[_ROW_G1:_ROW_G1 + 1, :HIDDEN]
        b1 = vecs[_ROW_B1:_ROW_B1 + 1, :HIDDEN]
        bi = vecs[_ROW_BI:_ROW_BI + 1, :INTER]
        bo = vecs[_ROW_BO:_ROW_BO + 1, :HIDDEN]
        g2 = vecs[_ROW_G2:_ROW_G2 + 1, :HIDDEN]
        b2 = vecs[_ROW_B2:_ROW_B2 + 1, :HIDDEN]

        # ---- BertSelfAttention: one full-width QKV projection ----
        qkv = jnp.dot(h, wqkv, preferred_element_type=jnp.float32) + bqkv
        q = qkv[:, :HIDDEN]
        k = qkv[:, HIDDEN:2 * HIDDEN]
        v = qkv[:, 2 * HIDDEN:3 * HIDDEN]

        # Per-head masked attention on activation slices only.  DGL module
        # computes sum(K_u * Q_v) per edge (NO 1/sqrt(head_dim) scaling) then
        # edge_softmax over incoming edges of each destination node.
        ctx_heads = []
        for hd in range(HEADS):
            s = hd * HEAD_DIM
            qh = q[:, s:s + HEAD_DIM]                   # [N, Dh]
            kh = k[:, s:s + HEAD_DIM]
            vh = v[:, s:s + HEAD_DIM]
            # logits[dst, src] = Q_dst . K_src  (contraction on last dims, no .T)
            logits = lax.dot_general(
                qh, kh, (((1,), (1,)), ((), ())),
                preferred_element_type=jnp.float32) + neg_bias
            m = jnp.max(logits, axis=-1, keepdims=True)
            p = jnp.exp(logits - m)
            attn = p / jnp.sum(p, axis=-1, keepdims=True)   # edge_softmax
            ctx_heads.append(jnp.dot(attn, vh,
                                     preferred_element_type=jnp.float32))
        ctx = jnp.concatenate(ctx_heads, axis=-1)       # [N, H]

        # ---- BertSelfOutput: dense + residual + LayerNorm ----
        x = _layernorm(jnp.dot(ctx, wao, preferred_element_type=jnp.float32)
                       + bao + h, g1, b1)

        # ---- BertIntermediate: dense + gelu (erf form) ----
        inter = jnp.dot(x, wi, preferred_element_type=jnp.float32) + bi
        inter = 0.5 * inter * (1.0 + lax.erf(inter *
                                             jnp.float32(1.0 / math.sqrt(2.0))))

        # ---- BertOutput: dense + residual + LayerNorm ----
        h = _layernorm(jnp.dot(inter, wo, preferred_element_type=jnp.float32)
                       + bo + x, g2, b2)

    out_ref[...] = h.astype(out_ref.dtype)


def _pack_vecs(p):
    """Pack the 10 small vector params of one layer into an [8, 128] block."""
    v = jnp.zeros((8, 128), jnp.float32)
    v = v.at[_ROW_BQKV, :3 * HIDDEN].set(
        jnp.concatenate([p["bq"], p["bk"], p["bv"]]))
    v = v.at[_ROW_BAO, :HIDDEN].set(p["bao"])
    v = v.at[_ROW_G1, :HIDDEN].set(p["g1"])
    v = v.at[_ROW_B1, :HIDDEN].set(p["b1"])
    v = v.at[_ROW_BI, :INTER].set(p["bi"])
    v = v.at[_ROW_BO, :HIDDEN].set(p["bo"])
    v = v.at[_ROW_G2, :HIDDEN].set(p["g2"])
    v = v.at[_ROW_B2, :HIDDEN].set(p["b2"])
    return v


def bert_encoder(h, adj, layer_params):
    """Full BertEncoder forward in ONE pallas_call (layer loop inside kernel)."""
    wqkv = jnp.stack([jnp.concatenate([p["wq"], p["wk"], p["wv"]], axis=1)
                      for p in layer_params])          # [L, H, 3H]
    wao = jnp.stack([p["wao"] for p in layer_params])  # [L, H, H]
    wi = jnp.stack([p["wi"] for p in layer_params])    # [L, H, INTER]
    wo = jnp.stack([p["wo"] for p in layer_params])    # [L, INTER, H]
    vecs = jnp.stack([_pack_vecs(p) for p in layer_params])  # [L, 8, 128]

    vmem = pl.BlockSpec(memory_space=pltpu.MemorySpace.VMEM)
    return pl.pallas_call(
        bert_encoder_kernel,
        out_shape=jax.ShapeDtypeStruct(h.shape, h.dtype),
        in_specs=[vmem] * 7,
        out_specs=vmem,
    )(h, adj, wqkv, wao, wi, wo, vecs)


# -------------------- pure-JAX reference (for verification) --------------------
def ref_layer(h, adj, p):
    Q = (h @ p["wq"] + p["bq"]).reshape(N_NODES, HEADS, HEAD_DIM)
    K = (h @ p["wk"] + p["bk"]).reshape(N_NODES, HEADS, HEAD_DIM)
    V = (h @ p["wv"] + p["bv"]).reshape(N_NODES, HEADS, HEAD_DIM)
    logits = jnp.einsum("dhe,she->hds", Q, K) + (1.0 - adj)[None] * (-1e30)
    attn = jax.nn.softmax(logits, axis=-1)
    ctx = jnp.einsum("hds,she->dhe", attn, V).reshape(N_NODES, HIDDEN)
    x = _layernorm(ctx @ p["wao"] + p["bao"] + h, p["g1"], p["b1"])
    inter = x @ p["wi"] + p["bi"]
    inter = 0.5 * inter * (1.0 + lax.erf(inter / jnp.float32(math.sqrt(2.0))))
    y = inter @ p["wo"] + p["bo"] + x
    return _layernorm(y, p["g2"], p["b2"])


def ref_encoder(h, adj, layer_params):
    for p in layer_params:
        h = ref_layer(h, adj, p)
    return h


def make_params(key):
    ks = jax.random.split(key, 8)
    std = 0.02
    f32 = jnp.float32
    return {
        "wq": jax.random.normal(ks[0], (HIDDEN, HIDDEN), f32) * std,
        "bq": jnp.zeros((HIDDEN,), f32),
        "wk": jax.random.normal(ks[1], (HIDDEN, HIDDEN), f32) * std,
        "bk": jnp.zeros((HIDDEN,), f32),
        "wv": jax.random.normal(ks[2], (HIDDEN, HIDDEN), f32) * std,
        "bv": jnp.zeros((HIDDEN,), f32),
        "wao": jax.random.normal(ks[3], (HIDDEN, HIDDEN), f32) * std,
        "bao": jnp.zeros((HIDDEN,), f32),
        "g1": jnp.ones((HIDDEN,), f32),
        "b1": jnp.zeros((HIDDEN,), f32),
        "wi": jax.random.normal(ks[4], (HIDDEN, INTER), f32) * std,
        "bi": jnp.zeros((INTER,), f32),
        "wo": jax.random.normal(ks[5], (INTER, HIDDEN), f32) * std,
        "bo": jnp.zeros((HIDDEN,), f32),
        "g2": jnp.ones((HIDDEN,), f32),
        "b2": jnp.zeros((HIDDEN,), f32),
    }


if __name__ == "__main__":
    key = jax.random.PRNGKey(0)
    k_h, k_p = jax.random.split(key)

    # node features
    h0 = jax.random.normal(k_h, (N_NODES, HIDDEN), jnp.float32)

    # graph: two fully-connected components of 4 nodes each (block-diagonal
    # adjacency, self-loops included) -> per-"sentence" full attention.
    comp = jnp.arange(N_NODES) // 4
    adj = (comp[:, None] == comp[None, :]).astype(jnp.float32)  # adj[dst, src]

    # BertEncoder deep-copies one BertLayer N_LAYERS times -> identical
    # parameter values in every layer; we mirror that by reusing one set.
    params = make_params(k_p)
    layer_params = [params for _ in range(N_LAYERS)]

    out = bert_encoder(h0, adj, layer_params)
    out = jax.block_until_ready(out)

    ref = jax.block_until_ready(ref_encoder(h0, adj, layer_params))
    assert out.shape == (N_NODES, HIDDEN)
    assert jnp.allclose(out, ref, rtol=1e-3, atol=1e-3), (
        float(jnp.max(jnp.abs(out - ref))))

    print("KERNEL_OK")
</pallas_src>

<mosaic_0001>
module attributes {stable_mosaic.version = 11 : i64} {
  func.func @bert_encoder_kernel(%arg0: memref<8x32xf32, #tpu.memory_space<vmem>>, %arg1: memref<8x8xf32, #tpu.memory_space<vmem>>, %arg2: memref<2x32x96xf32, #tpu.memory_space<vmem>>, %arg3: memref<2x32x32xf32, #tpu.memory_space<vmem>>, %arg4: memref<2x32x64xf32, #tpu.memory_space<vmem>>, %arg5: memref<2x64x32xf32, #tpu.memory_space<vmem>>, %arg6: memref<2x8x128xf32, #tpu.memory_space<vmem>>, %arg7: memref<8x32xf32, #tpu.memory_space<vmem>>) attributes {dimension_semantics = [], scalar_prefetch = 0 : i64, scratch_operands = 0 : i64, tpu.core_type = #tpu.core_type<tc>} {
    %c0 = arith.constant 0 : index
    %c0_0 = arith.constant 0 : index
    %0 = vector.load %arg0[%c0, %c0_0] : memref<8x32xf32, #tpu.memory_space<vmem>>, vector<8x32xf32>
    %c0_1 = arith.constant 0 : index
    %c0_2 = arith.constant 0 : index
    %1 = vector.load %arg1[%c0_1, %c0_2] : memref<8x8xf32, #tpu.memory_space<vmem>>, vector<8x8xf32>
    %cst = arith.constant 1.000000e+00 : f32
    %2 = vector.broadcast %cst : f32 to vector<8x8xf32>
    %3 = arith.subf %2, %1 : vector<8x8xf32>
    %cst_3 = arith.constant -1.000000e+30 : f32
    %4 = vector.broadcast %cst_3 : f32 to vector<8x8xf32>
    %5 = arith.mulf %3, %4 : vector<8x8xf32>
    %c0_4 = arith.constant 0 : index
    %c0_5 = arith.constant 0 : index
    %c0_6 = arith.constant 0 : index
    %6 = vector.load %arg2[%c0_4, %c0_5, %c0_6] : memref<2x32x96xf32, #tpu.memory_space<vmem>>, vector<1x32x96xf32>
    %7 = vector.shape_cast %6 : vector<1x32x96xf32> to vector<32x96xf32>
    %c0_7 = arith.constant 0 : index
    %c0_8 = arith.constant 0 : index
    %c0_9 = arith.constant 0 : index
    %8 = vector.load %arg3[%c0_7, %c0_8, %c0_9] : memref<2x32x32xf32, #tpu.memory_space<vmem>>, vector<1x32x32xf32>
    %9 = vector.shape_cast %8 : vector<1x32x32xf32> to vector<32x32xf32>
    %c0_10 = arith.constant 0 : index
    %c0_11 = arith.constant 0 : index
    %c0_12 = arith.constant 0 : index
    %10 = vector.load %arg4[%c0_10, %c0_11, %c0_12] : memref<2x32x64xf32, #tpu.memory_space<vmem>>, vector<1x32x64xf32>
    %11 = vector.shape_cast %10 : vector<1x32x64xf32> to vector<32x64xf32>
    %c0_13 = arith.constant 0 : index
    %c0_14 = arith.constant 0 : index
    %c0_15 = arith.constant 0 : index
    %12 = vector.load %arg5[%c0_13, %c0_14, %c0_15] : memref<2x64x32xf32, #tpu.memory_space<vmem>>, vector<1x64x32xf32>
    %13 = vector.shape_cast %12 : vector<1x64x32xf32> to vector<64x32xf32>
    %c0_16 = arith.constant 0 : index
    %c0_17 = arith.constant 0 : index
    %c0_18 = arith.constant 0 : index
    %14 = vector.load %arg6[%c0_16, %c0_17, %c0_18] : memref<2x8x128xf32, #tpu.memory_space<vmem>>, vector<1x8x128xf32>
    %15 = vector.shape_cast %14 : vector<1x8x128xf32> to vector<8x128xf32>
    %16 = vector.extract_strided_slice %15 {offsets = [0, 0], sizes = [1, 96], strides = [1, 1]} : vector<8x128xf32> to vector<1x96xf32>
    %17 = vector.extract_strided_slice %15 {offsets = [1, 0], sizes = [1, 32], strides = [1, 1]} : vector<8x128xf32> to vector<1x32xf32>
    %18 = vector.extract_strided_slice %15 {offsets = [2, 0], sizes = [1, 32], strides = [1, 1]} : vector<8x128xf32> to vector<1x32xf32>
    %19 = vector.extract_strided_slice %15 {offsets = [3, 0], sizes = [1, 32], strides = [1, 1]} : vector<8x128xf32> to vector<1x32xf32>
    %20 = vector.extract_strided_slice %15 {offsets = [4, 0], sizes = [1, 64], strides = [1, 1]} : vector<8x128xf32> to vector<1x64xf32>
    %21 = vector.extract_strided_slice %15 {offsets = [5, 0], sizes = [1, 32], strides = [1, 1]} : vector<8x128xf32> to vector<1x32xf32>
    %22 = vector.extract_strided_slice %15 {offsets = [6, 0], sizes = [1, 32], strides = [1, 1]} : vector<8x128xf32> to vector<1x32xf32>
    %23 = vector.extract_strided_slice %15 {offsets = [7, 0], sizes = [1, 32], strides = [1, 1]} : vector<8x128xf32> to vector<1x32xf32>
    %cst_19 = arith.constant dense<0.000000e+00> : vector<8x96xf32>
    %24 = tpu.matmul %0, %7, %cst_19 {dimension_numbers = #tpu.dot_dimension_numbers<[1], [0], [0], [1], [0, 0, 1, 1], [], []>} : vector<8x32xf32>, vector<32x96xf32>, vector<8x96xf32> -> vector<8x96xf32>
    %25 = vector.broadcast %16 : vector<1x96xf32> to vector<8x96xf32>
    %26 = arith.addf %24, %25 : vector<8x96xf32>
    %27 = vector.extract_strided_slice %26 {offsets = [0, 0], sizes = [8, 32], strides = [1, 1]} : vector<8x96xf32> to vector<8x32xf32>
    %28 = vector.extract_strided_slice %26 {offsets = [0, 32], sizes = [8, 32], strides = [1, 1]} : vector<8x96xf32> to vector<8x32xf32>
    %29 = vector.extract_strided_slice %26 {offsets = [0, 64], sizes = [8, 32], strides = [1, 1]} : vector<8x96xf32> to vector<8x32xf32>
    %30 = vector.extract_strided_slice %27 {offsets = [0, 0], sizes = [8, 8], strides = [1, 1]} : vector<8x32xf32> to vector<8x8xf32>
    %31 = vector.extract_strided_slice %28 {offsets = [0, 0], sizes = [8, 8], strides = [1, 1]} : vector<8x32xf32> to vector<8x8xf32>
    %32 = vector.extract_strided_slice %29 {offsets = [0, 0], sizes = [8, 8], strides = [1, 1]} : vector<8x32xf32> to vector<8x8xf32>
    %cst_20 = arith.constant dense<0.000000e+00> : vector<8x8xf32>
    %33 = tpu.matmul %30, %31, %cst_20 {dimension_numbers = #tpu.dot_dimension_numbers<[1], [1], [0], [0], [0, 0, 1, 0], [], []>} : vector<8x8xf32>, vector<8x8xf32>, vector<8x8xf32> -> vector<8x8xf32>
    %34 = arith.addf %33, %5 : vector<8x8xf32>
    %cst_21 = arith.constant dense<0xFF800000> : vector<8xf32>
    %35 = vector.multi_reduction <maximumf>, %34, %cst_21 [1] : vector<8x8xf32> to vector<8xf32>
    %36 = vector.shape_cast %35 : vector<8xf32> to vector<8x1xf32>
    %37 = vector.broadcast %36 : vector<8x1xf32> to vector<8x8xf32>
    %38 = arith.subf %34, %37 : vector<8x8xf32>
    %39 = math.exp %38 : vector<8x8xf32>
    %cst_22 = arith.constant dense<0.000000e+00> : vector<8xf32>
    %40 = vector.multi_reduction <add>, %39, %cst_22 [1] : vector<8x8xf32> to vector<8xf32>
    %41 = vector.shape_cast %40 : vector<8xf32> to vector<8x1xf32>
    %42 = vector.broadcast %41 : vector<8x1xf32> to vector<8x8xf32>
    %43 = arith.divf %39, %42 : vector<8x8xf32>
    %cst_23 = arith.constant dense<0.000000e+00> : vector<8x8xf32>
    %44 = tpu.matmul %43, %32, %cst_23 {dimension_numbers = #tpu.dot_dimension_numbers<[1], [0], [0], [1], [0, 0, 1, 1], [], []>} : vector<8x8xf32>, vector<8x8xf32>, vector<8x8xf32> -> vector<8x8xf32>
    %45 = vector.extract_strided_slice %27 {offsets = [0, 8], sizes = [8, 8], strides = [1, 1]} : vector<8x32xf32> to vector<8x8xf32>
    %46 = vector.extract_strided_slice %28 {offsets = [0, 8], sizes = [8, 8], strides = [1, 1]} : vector<8x32xf32> to vector<8x8xf32>
    %47 = vector.extract_strided_slice %29 {offsets = [0, 8], sizes = [8, 8], strides = [1, 1]} : vector<8x32xf32> to vector<8x8xf32>
    %cst_24 = arith.constant dense<0.000000e+00> : vector<8x8xf32>
    %48 = tpu.matmul %45, %46, %cst_24 {dimension_numbers = #tpu.dot_dimension_numbers<[1], [1], [0], [0], [0, 0, 1, 0], [], []>} : vector<8x8xf32>, vector<8x8xf32>, vector<8x8xf32> -> vector<8x8xf32>
    %49 = arith.addf %48, %5 : vector<8x8xf32>
    %cst_25 = arith.constant dense<0xFF800000> : vector<8xf32>
    %50 = vector.multi_reduction <maximumf>, %49, %cst_25 [1] : vector<8x8xf32> to vector<8xf32>
    %51 = vector.shape_cast %50 : vector<8xf32> to vector<8x1xf32>
    %52 = vector.broadcast %51 : vector<8x1xf32> to vector<8x8xf32>
    %53 = arith.subf %49, %52 : vector<8x8xf32>
    %54 = math.exp %53 : vector<8x8xf32>
    %cst_26 = arith.constant dense<0.000000e+00> : vector<8xf32>
    %55 = vector.multi_reduction <add>, %54, %cst_26 [1] : vector<8x8xf32> to vector<8xf32>
    %56 = vector.shape_cast %55 : vector<8xf32> to vector<8x1xf32>
    %57 = vector.broadcast %56 : vector<8x1xf32> to vector<8x8xf32>
    %58 = arith.divf %54, %57 : vector<8x8xf32>
    %cst_27 = arith.constant dense<0.000000e+00> : vector<8x8xf32>
    %59 = tpu.matmul %58, %47, %cst_27 {dimension_numbers = #tpu.dot_dimension_numbers<[1], [0], [0], [1], [0, 0, 1, 1], [], []>} : vector<8x8xf32>, vector<8x8xf32>, vector<8x8xf32> -> vector<8x8xf32>
    %60 = vector.extract_strided_slice %27 {offsets = [0, 16], sizes = [8, 8], strides = [1, 1]} : vector<8x32xf32> to vector<8x8xf32>
    %61 = vector.extract_strided_slice %28 {offsets = [0, 16], sizes = [8, 8], strides = [1, 1]} : vector<8x32xf32> to vector<8x8xf32>
    %62 = vector.extract_strided_slice %29 {offsets = [0, 16], sizes = [8, 8], strides = [1, 1]} : vector<8x32xf32> to vector<8x8xf32>
    %cst_28 = arith.constant dense<0.000000e+00> : vector<8x8xf32>
    %63 = tpu.matmul %60, %61, %cst_28 {dimension_numbers = #tpu.dot_dimension_numbers<[1], [1], [0], [0], [0, 0, 1, 0], [], []>} : vector<8x8xf32>, vector<8x8xf32>, vector<8x8xf32> -> vector<8x8xf32>
    %64 = arith.addf %63, %5 : vector<8x8xf32>
    %cst_29 = arith.constant dense<0xFF800000> : vector<8xf32>
    %65 = vector.multi_reduction <maximumf>, %64, %cst_29 [1] : vector<8x8xf32> to vector<8xf32>
    %66 = vector.shape_cast %65 : vector<8xf32> to vector<8x1xf32>
    %67 = vector.broadcast %66 : vector<8x1xf32> to vector<8x8xf32>
    %68 = arith.subf %64, %67 : vector<8x8xf32>
    %69 = math.exp %68 : vector<8x8xf32>
    %cst_30 = arith.constant dense<0.000000e+00> : vector<8xf32>
    %70 = vector.multi_reduction <add>, %69, %cst_30 [1] : vector<8x8xf32> to vector<8xf32>
    %71 = vector.shape_cast %70 : vector<8xf32> to vector<8x1xf32>
    %72 = vector.broadcast %71 : vector<8x1xf32> to vector<8x8xf32>
    %73 = arith.divf %69, %72 : vector<8x8xf32>
    %cst_31 = arith.constant dense<0.000000e+00> : vector<8x8xf32>
    %74 = tpu.matmul %73, %62, %cst_31 {dimension_numbers = #tpu.dot_dimension_numbers<[1], [0], [0], [1], [0, 0, 1, 1], [], []>} : vector<8x8xf32>, vector<8x8xf32>, vector<8x8xf32> -> vector<8x8xf32>
    %75 = vector.extract_strided_slice %27 {offsets = [0, 24], sizes = [8, 8], strides = [1, 1]} : vector<8x32xf32> to vector<8x8xf32>
    %76 = vector.extract_strided_slice %28 {offsets = [0, 24], sizes = [8, 8], strides = [1, 1]} : vector<8x32xf32> to vector<8x8xf32>
    %77 = vector.extract_strided_slice %29 {offsets = [0, 24], sizes = [8, 8], strides = [1, 1]} : vector<8x32xf32> to vector<8x8xf32>
    %cst_32 = arith.constant dense<0.000000e+00> : vector<8x8xf32>
    %78 = tpu.matmul %75, %76, %cst_32 {dimension_numbers = #tpu.dot_dimension_numbers<[1], [1], [0], [0], [0, 0, 1, 0], [], []>} : vector<8x8xf32>, vector<8x8xf32>, vector<8x8xf32> -> vector<8x8xf32>
    %79 = arith.addf %78, %5 : vector<8x8xf32>
    %cst_33 = arith.constant dense<0xFF800000> : vector<8xf32>
    %80 = vector.multi_reduction <maximumf>, %79, %cst_33 [1] : vector<8x8xf32> to vector<8xf32>
    %81 = vector.shape_cast %80 : vector<8xf32> to vector<8x1xf32>
    %82 = vector.broadcast %81 : vector<8x1xf32> to vector<8x8xf32>
    %83 = arith.subf %79, %82 : vector<8x8xf32>
    %84 = math.exp %83 : vector<8x8xf32>
    %cst_34 = arith.constant dense<0.000000e+00> : vector<8xf32>
    %85 = vector.multi_reduction <add>, %84, %cst_34 [1] : vector<8x8xf32> to vector<8xf32>
    %86 = vector.shape_cast %85 : vector<8xf32> to vector<8x1xf32>
    %87 = vector.broadcast %86 : vector<8x1xf32> to vector<8x8xf32>
    %88 = arith.divf %84, %87 : vector<8x8xf32>
    %cst_35 = arith.constant dense<0.000000e+00> : vector<8x8xf32>
    %89 = tpu.matmul %88, %77, %cst_35 {dimension_numbers = #tpu.dot_dimension_numbers<[1], [0], [0], [1], [0, 0, 1, 1], [], []>} : vector<8x8xf32>, vector<8x8xf32>, vector<8x8xf32> -> vector<8x8xf32>
    %90 = tpu.concatenate %44, %59, %74, %89 in 1 : vector<8x8xf32>, vector<8x8xf32>, vector<8x8xf32>, vector<8x8xf32> -> vector<8x32xf32>
    %cst_36 = arith.constant dense<0.000000e+00> : vector<8x32xf32>
    %91 = tpu.matmul %90, %9, %cst_36 {dimension_numbers = #tpu.dot_dimension_numbers<[1], [0], [0], [1], [0, 0, 1, 1], [], []>} : vector<8x32xf32>, vector<32x32xf32>, vector<8x32xf32> -> vector<8x32xf32>
    %92 = vector.broadcast %17 : vector<1x32xf32> to vector<8x32xf32>
    %93 = arith.addf %91, %92 : vector<8x32xf32>
    %94 = arith.addf %93, %0 : vector<8x32xf32>
    %cst_37 = arith.constant dense<0.000000e+00> : vector<8xf32>
    %95 = vector.multi_reduction <add>, %94, %cst_37 [1] : vector<8x32xf32> to vector<8xf32>
    %96 = vector.shape_cast %95 : vector<8xf32> to vector<8x1xf32>
    %cst_38 = arith.constant 3.200000e+01 : f32
    %97 = vector.broadcast %cst_38 : f32 to vector<8x1xf32>
    %98 = arith.divf %96, %97 : vector<8x1xf32>
    %99 = vector.broadcast %98 : vector<8x1xf32> to vector<8x32xf32>
    %100 = arith.subf %94, %99 : vector<8x32xf32>
    %101 = arith.mulf %100, %100 : vector<8x32xf32>
    %cst_39 = arith.constant dense<0.000000e+00> : vector<8xf32>
    %102 = vector.multi_reduction <add>, %101, %cst_39 [1] : vector<8x32xf32> to vector<8xf32>
    %103 = vector.shape_cast %102 : vector<8xf32> to vector<8x1xf32>
    %cst_40 = arith.constant 3.200000e+01 : f32
    %104 = vector.broadcast %cst_40 : f32 to vector<8x1xf32>
    %105 = arith.divf %103, %104 : vector<8x1xf32>
    %106 = vector.broadcast %98 : vector<8x1xf32> to vector<8x32xf32>
    %107 = arith.subf %94, %106 : vector<8x32xf32>
    %cst_41 = arith.constant 9.99999996E-13 : f32
    %108 = vector.broadcast %cst_41 : f32 to vector<8x1xf32>
    %109 = arith.addf %105, %108 : vector<8x1xf32>
    %110 = math.rsqrt %109 : vector<8x1xf32>
    %111 = vector.broadcast %110 : vector<8x1xf32> to vector<8x32xf32>
    %112 = arith.mulf %107, %111 : vector<8x32xf32>
    %113 = vector.broadcast %18 : vector<1x32xf32> to vector<8x32xf32>
    %114 = arith.mulf %112, %113 : vector<8x32xf32>
    %115 = vector.broadcast %19 : vector<1x32xf32> to vector<8x32xf32>
    %116 = arith.addf %114, %115 : vector<8x32xf32>
    %cst_42 = arith.constant dense<0.000000e+00> : vector<8x64xf32>
    %117 = tpu.matmul %116, %11, %cst_42 {dimension_numbers = #tpu.dot_dimension_numbers<[1], [0], [0], [1], [0, 0, 1, 1], [], []>} : vector<8x32xf32>, vector<32x64xf32>, vector<8x64xf32> -> vector<8x64xf32>
    %118 = vector.broadcast %20 : vector<1x64xf32> to vector<8x64xf32>
    %119 = arith.addf %117, %118 : vector<8x64xf32>
    %cst_43 = arith.constant 5.000000e-01 : f32
    %120 = vector.broadcast %cst_43 : f32 to vector<8x64xf32>
    %121 = arith.mulf %120, %119 : vector<8x64xf32>
    %cst_44 = arith.constant 0.707106769 : f32
    %122 = vector.broadcast %cst_44 : f32 to vector<8x64xf32>
    %123 = arith.mulf %119, %122 : vector<8x64xf32>
    %124 = math.erf %123 : vector<8x64xf32>
    %cst_45 = arith.constant 1.000000e+00 : f32
    %125 = vector.broadcast %cst_45 : f32 to vector<8x64xf32>
    %126 = arith.addf %125, %124 : vector<8x64xf32>
    %127 = arith.mulf %121, %126 : vector<8x64xf32>
    %cst_46 = arith.constant dense<0.000000e+00> : vector<8x32xf32>
    %128 = tpu.matmul %127, %13, %cst_46 {dimension_numbers = #tpu.dot_dimension_numbers<[1], [0], [0], [1], [0, 0, 1, 1], [], []>} : vector<8x64xf32>, vector<64x32xf32>, vector<8x32xf32> -> vector<8x32xf32>
    %129 = vector.broadcast %21 : vector<1x32xf32> to vector<8x32xf32>
    %130 = arith.addf %128, %129 : vector<8x32xf32>
    %131 = arith.addf %130, %116 : vector<8x32xf32>
    %cst_47 = arith.constant dense<0.000000e+00> : vector<8xf32>
    %132 = vector.multi_reduction <add>, %131, %cst_47 [1] : vector<8x32xf32> to vector<8xf32>
    %133 = vector.shape_cast %132 : vector<8xf32> to vector<8x1xf32>
    %cst_48 = arith.constant 3.200000e+01 : f32
    %134 = vector.broadcast %cst_48 : f32 to vector<8x1xf32>
    %135 = arith.divf %133, %134 : vector<8x1xf32>
    %136 = vector.broadcast %135 : vector<8x1xf32> to vector<8x32xf32>
    %137 = arith.subf %131, %136 : vector<8x32xf32>
    %138 = arith.mulf %137, %137 : vector<8x32xf32>
    %cst_49 = arith.constant dense<0.000000e+00> : vector<8xf32>
    %139 = vector.multi_reduction <add>, %138, %cst_49 [1] : vector<8x32xf32> to vector<8xf32>
    %140 = vector.shape_cast %139 : vector<8xf32> to vector<8x1xf32>
    %cst_50 = arith.constant 3.200000e+01 : f32
    %141 = vector.broadcast %cst_50 : f32 to vector<8x1xf32>
    %142 = arith.divf %140, %141 : vector<8x1xf32>
    %143 = vector.broadcast %135 : vector<8x1xf32> to vector<8x32xf32>
    %144 = arith.subf %131, %143 : vector<8x32xf32>
    %cst_51 = arith.constant 9.99999996E-13 : f32
    %145 = vector.broadcast %cst_51 : f32 to vector<8x1xf32>
    %146 = arith.addf %142, %145 : vector<8x1xf32>
    %147 = math.rsqrt %146 : vector<8x1xf32>
    %148 = vector.broadcast %147 : vector<8x1xf32> to vector<8x32xf32>
    %149 = arith.mulf %144, %148 : vector<8x32xf32>
    %150 = vector.broadcast %22 : vector<1x32xf32> to vector<8x32xf32>
    %151 = arith.mulf %149, %150 : vector<8x32xf32>
    %152 = vector.broadcast %23 : vector<1x32xf32> to vector<8x32xf32>
    %153 = arith.addf %151, %152 : vector<8x32xf32>
    %c1 = arith.constant 1 : index
    %c0_52 = arith.constant 0 : index
    %c0_53 = arith.constant 0 : index
    %154 = vector.load %arg2[%c1, %c0_52, %c0_53] : memref<2x32x96xf32, #tpu.memory_space<vmem>>, vector<1x32x96xf32>
    %155 = vector.shape_cast %154 : vector<1x32x96xf32> to vector<32x96xf32>
    %c1_54 = arith.constant 1 : index
    %c0_55 = arith.constant 0 : index
    %c0_56 = arith.constant 0 : index
    %156 = vector.load %arg3[%c1_54, %c0_55, %c0_56] : memref<2x32x32xf32, #tpu.memory_space<vmem>>, vector<1x32x32xf32>
    %157 = vector.shape_cast %156 : vector<1x32x32xf32> to vector<32x32xf32>
    %c1_57 = arith.constant 1 : index
    %c0_58 = arith.constant 0 : index
    %c0_59 = arith.constant 0 : index
    %158 = vector.load %arg4[%c1_57, %c0_58, %c0_59] : memref<2x32x64xf32, #tpu.memory_space<vmem>>, vector<1x32x64xf32>
    %159 = vector.shape_cast %158 : vector<1x32x64xf32> to vector<32x64xf32>
    %c1_60 = arith.constant 1 : index
    %c0_61 = arith.constant 0 : index
    %c0_62 = arith.constant 0 : index
    %160 = vector.load %arg5[%c1_60, %c0_61, %c0_62] : memref<2x64x32xf32, #tpu.memory_space<vmem>>, vector<1x64x32xf32>
    %161 = vector.shape_cast %160 : vector<1x64x32xf32> to vector<64x32xf32>
    %c1_63 = arith.constant 1 : index
    %c0_64 = arith.constant 0 : index
    %c0_65 = arith.constant 0 : index
    %162 = vector.load %arg6[%c1_63, %c0_64, %c0_65] : memref<2x8x128xf32, #tpu.memory_space<vmem>>, vector<1x8x128xf32>
    %163 = vector.shape_cast %162 : vector<1x8x128xf32> to vector<8x128xf32>
    %164 = vector.extract_strided_slice %163 {offsets = [0, 0], sizes = [1, 96], strides = [1, 1]} : vector<8x128xf32> to vector<1x96xf32>
    %165 = vector.extract_strided_slice %163 {offsets = [1, 0], sizes = [1, 32], strides = [1, 1]} : vector<8x128xf32> to vector<1x32xf32>
    %166 = vector.extract_strided_slice %163 {offsets = [2, 0], sizes = [1, 32], strides = [1, 1]} : vector<8x128xf32> to vector<1x32xf32>
    %167 = vector.extract_strided_slice %163 {offsets = [3, 0], sizes = [1, 32], strides = [1, 1]} : vector<8x128xf32> to vector<1x32xf32>
    %168 = vector.extract_strided_slice %163 {offsets = [4, 0], sizes = [1, 64], strides = [1, 1]} : vector<8x128xf32> to vector<1x64xf32>
    %169 = vector.extract_strided_slice %163 {offsets = [5, 0], sizes = [1, 32], strides = [1, 1]} : vector<8x128xf32> to vector<1x32xf32>
    %170 = vector.extract_strided_slice %163 {offsets = [6, 0], sizes = [1, 32], strides = [1, 1]} : vector<8x128xf32> to vector<1x32xf32>
    %171 = vector.extract_strided_slice %163 {offsets = [7, 0], sizes = [1, 32], strides = [1, 1]} : vector<8x128xf32> to vector<1x32xf32>
    %cst_66 = arith.constant dense<0.000000e+00> : vector<8x96xf32>
    %172 = tpu.matmul %153, %155, %cst_66 {dimension_numbers = #tpu.dot_dimension_numbers<[1], [0], [0], [1], [0, 0, 1, 1], [], []>} : vector<8x32xf32>, vector<32x96xf32>, vector<8x96xf32> -> vector<8x96xf32>
    %173 = vector.broadcast %164 : vector<1x96xf32> to vector<8x96xf32>
    %174 = arith.addf %172, %173 : vector<8x96xf32>
    %175 = vector.extract_strided_slice %174 {offsets = [0, 0], sizes = [8, 32], strides = [1, 1]} : vector<8x96xf32> to vector<8x32xf32>
    %176 = vector.extract_strided_slice %174 {offsets = [0, 32], sizes = [8, 32], strides = [1, 1]} : vector<8x96xf32> to vector<8x32xf32>
    %177 = vector.extract_strided_slice %174 {offsets = [0, 64], sizes = [8, 32], strides = [1, 1]} : vector<8x96xf32> to vector<8x32xf32>
    %178 = vector.extract_strided_slice %175 {offsets = [0, 0], sizes = [8, 8], strides = [1, 1]} : vector<8x32xf32> to vector<8x8xf32>
    %179 = vector.extract_strided_slice %176 {offsets = [0, 0], sizes = [8, 8], strides = [1, 1]} : vector<8x32xf32> to vector<8x8xf32>
    %180 = vector.extract_strided_slice %177 {offsets = [0, 0], sizes = [8, 8], strides = [1, 1]} : vector<8x32xf32> to vector<8x8xf32>
    %cst_67 = arith.constant dense<0.000000e+00> : vector<8x8xf32>
    %181 = tpu.matmul %178, %179, %cst_67 {dimension_numbers = #tpu.dot_dimension_numbers<[1], [1], [0], [0], [0, 0, 1, 0], [], []>} : vector<8x8xf32>, vector<8x8xf32>, vector<8x8xf32> -> vector<8x8xf32>
    %182 = arith.addf %181, %5 : vector<8x8xf32>
    %cst_68 = arith.constant dense<0xFF800000> : vector<8xf32>
    %183 = vector.multi_reduction <maximumf>, %182, %cst_68 [1] : vector<8x8xf32> to vector<8xf32>
    %184 = vector.shape_cast %183 : vector<8xf32> to vector<8x1xf32>
    %185 = vector.broadcast %184 : vector<8x1xf32> to vector<8x8xf32>
    %186 = arith.subf %182, %185 : vector<8x8xf32>
    %187 = math.exp %186 : vector<8x8xf32>
    %cst_69 = arith.constant dense<0.000000e+00> : vector<8xf32>
    %188 = vector.multi_reduction <add>, %187, %cst_69 [1] : vector<8x8xf32> to vector<8xf32>
    %189 = vector.shape_cast %188 : vector<8xf32> to vector<8x1xf32>
    %190 = vector.broadcast %189 : vector<8x1xf32> to vector<8x8xf32>
    %191 = arith.divf %187, %190 : vector<8x8xf32>
    %cst_70 = arith.constant dense<0.000000e+00> : vector<8x8xf32>
    %192 = tpu.matmul %191, %180, %cst_70 {dimension_numbers = #tpu.dot_dimension_numbers<[1], [0], [0], [1], [0, 0, 1, 1], [], []>} : vector<8x8xf32>, vector<8x8xf32>, vector<8x8xf32> -> vector<8x8xf32>
    %193 = vector.extract_strided_slice %175 {offsets = [0, 8], sizes = [8, 8], strides = [1, 1]} : vector<8x32xf32> to vector<8x8xf32>
    %194 = vector.extract_strided_slice %176 {offsets = [0, 8], sizes = [8, 8], strides = [1, 1]} : vector<8x32xf32> to vector<8x8xf32>
    %195 = vector.extract_strided_slice %177 {offsets = [0, 8], sizes = [8, 8], strides = [1, 1]} : vector<8x32xf32> to vector<8x8xf32>
    %cst_71 = arith.constant dense<0.000000e+00> : vector<8x8xf32>
    %196 = tpu.matmul %193, %194, %cst_71 {dimension_numbers = #tpu.dot_dimension_numbers<[1], [1], [0], [0], [0, 0, 1, 0], [], []>} : vector<8x8xf32>, vector<8x8xf32>, vector<8x8xf32> -> vector<8x8xf32>
    %197 = arith.addf %196, %5 : vector<8x8xf32>
    %cst_72 = arith.constant dense<0xFF800000> : vector<8xf32>
    %198 = vector.multi_reduction <maximumf>, %197, %cst_72 [1] : vector<8x8xf32> to vector<8xf32>
    %199 = vector.shape_cast %198 : vector<8xf32> to vector<8x1xf32>
    %200 = vector.broadcast %199 : vector<8x1xf32> to vector<8x8xf32>
    %201 = arith.subf %197, %200 : vector<8x8xf32>
    %202 = math.exp %201 : vector<8x8xf32>
    %cst_73 = arith.constant dense<0.000000e+00> : vector<8xf32>
    %203 = vector.multi_reduction <add>, %202, %cst_73 [1] : vector<8x8xf32> to vector<8xf32>
    %204 = vector.shape_cast %203 : vector<8xf32> to vector<8x1xf32>
    %205 = vector.broadcast %204 : vector<8x1xf32> to vector<8x8xf32>
    %206 = arith.divf %202, %205 : vector<8x8xf32>
    %cst_74 = arith.constant dense<0.000000e+00> : vector<8x8xf32>
    %207 = tpu.matmul %206, %195, %cst_74 {dimension_numbers = #tpu.dot_dimension_numbers<[1], [0], [0], [1], [0, 0, 1, 1], [], []>} : vector<8x8xf32>, vector<8x8xf32>, vector<8x8xf32> -> vector<8x8xf32>
    %208 = vector.extract_strided_slice %175 {offsets = [0, 16], sizes = [8, 8], strides = [1, 1]} : vector<8x32xf32> to vector<8x8xf32>
    %209 = vector.extract_strided_slice %176 {offsets = [0, 16], sizes = [8, 8], strides = [1, 1]} : vector<8x32xf32> to vector<8x8xf32>
    %210 = vector.extract_strided_slice %177 {offsets = [0, 16], sizes = [8, 8], strides = [1, 1]} : vector<8x32xf32> to vector<8x8xf32>
    %cst_75 = arith.constant dense<0.000000e+00> : vector<8x8xf32>
    %211 = tpu.matmul %208, %209, %cst_75 {dimension_numbers = #tpu.dot_dimension_numbers<[1], [1], [0], [0], [0, 0, 1, 0], [], []>} : vector<8x8xf32>, vector<8x8xf32>, vector<8x8xf32> -> vector<8x8xf32>
    %212 = arith.addf %211, %5 : vector<8x8xf32>
    %cst_76 = arith.constant dense<0xFF800000> : vector<8xf32>
    %213 = vector.multi_reduction <maximumf>, %212, %cst_76 [1] : vector<8x8xf32> to vector<8xf32>
    %214 = vector.shape_cast %213 : vector<8xf32> to vector<8x1xf32>
    %215 = vector.broadcast %214 : vector<8x1xf32> to vector<8x8xf32>
    %216 = arith.subf %212, %215 : vector<8x8xf32>
    %217 = math.exp %216 : vector<8x8xf32>
    %cst_77 = arith.constant dense<0.000000e+00> : vector<8xf32>
    %218 = vector.multi_reduction <add>, %217, %cst_77 [1] : vector<8x8xf32> to vector<8xf32>
    %219 = vector.shape_cast %218 : vector<8xf32> to vector<8x1xf32>
    %220 = vector.broadcast %219 : vector<8x1xf32> to vector<8x8xf32>
    %221 = arith.divf %217, %220 : vector<8x8xf32>
    %cst_78 = arith.constant dense<0.000000e+00> : vector<8x8xf32>
    %222 = tpu.matmul %221, %210, %cst_78 {dimension_numbers = #tpu.dot_dimension_numbers<[1], [0], [0], [1], [0, 0, 1, 1], [], []>} : vector<8x8xf32>, vector<8x8xf32>, vector<8x8xf32> -> vector<8x8xf32>
    %223 = vector.extract_strided_slice %175 {offsets = [0, 24], sizes = [8, 8], strides = [1, 1]} : vector<8x32xf32> to vector<8x8xf32>
    %224 = vector.extract_strided_slice %176 {offsets = [0, 24], sizes = [8, 8], strides = [1, 1]} : vector<8x32xf32> to vector<8x8xf32>
    %225 = vector.extract_strided_slice %177 {offsets = [0, 24], sizes = [8, 8], strides = [1, 1]} : vector<8x32xf32> to vector<8x8xf32>
    %cst_79 = arith.constant dense<0.000000e+00> : vector<8x8xf32>
    %226 = tpu.matmul %223, %224, %cst_79 {dimension_numbers = #tpu.dot_dimension_numbers<[1], [1], [0], [0], [0, 0, 1, 0], [], []>} : vector<8x8xf32>, vector<8x8xf32>, vector<8x8xf32> -> vector<8x8xf32>
    %227 = arith.addf %226, %5 : vector<8x8xf32>
    %cst_80 = arith.constant dense<0xFF800000> : vector<8xf32>
    %228 = vector.multi_reduction <maximumf>, %227, %cst_80 [1] : vector<8x8xf32> to vector<8xf32>
    %229 = vector.shape_cast %228 : vector<8xf32> to vector<8x1xf32>
    %230 = vector.broadcast %229 : vector<8x1xf32> to vector<8x8xf32>
    %231 = arith.subf %227, %230 : vector<8x8xf32>
    %232 = math.exp %231 : vector<8x8xf32>
    %cst_81 = arith.constant dense<0.000000e+00> : vector<8xf32>
    %233 = vector.multi_reduction <add>, %232, %cst_81 [1] : vector<8x8xf32> to vector<8xf32>
    %234 = vector.shape_cast %233 : vector<8xf32> to vector<8x1xf32>
    %235 = vector.broadcast %234 : vector<8x1xf32> to vector<8x8xf32>
    %236 = arith.divf %232, %235 : vector<8x8xf32>
    %cst_82 = arith.constant dense<0.000000e+00> : vector<8x8xf32>
    %237 = tpu.matmul %236, %225, %cst_82 {dimension_numbers = #tpu.dot_dimension_numbers<[1], [0], [0], [1], [0, 0, 1, 1], [], []>} : vector<8x8xf32>, vector<8x8xf32>, vector<8x8xf32> -> vector<8x8xf32>
    %238 = tpu.concatenate %192, %207, %222, %237 in 1 : vector<8x8xf32>, vector<8x8xf32>, vector<8x8xf32>, vector<8x8xf32> -> vector<8x32xf32>
    %cst_83 = arith.constant dense<0.000000e+00> : vector<8x32xf32>
    %239 = tpu.matmul %238, %157, %cst_83 {dimension_numbers = #tpu.dot_dimension_numbers<[1], [0], [0], [1], [0, 0, 1, 1], [], []>} : vector<8x32xf32>, vector<32x32xf32>, vector<8x32xf32> -> vector<8x32xf32>
    %240 = vector.broadcast %165 : vector<1x32xf32> to vector<8x32xf32>
    %241 = arith.addf %239, %240 : vector<8x32xf32>
    %242 = arith.addf %241, %153 : vector<8x32xf32>
    %cst_84 = arith.constant dense<0.000000e+00> : vector<8xf32>
    %243 = vector.multi_reduction <add>, %242, %cst_84 [1] : vector<8x32xf32> to vector<8xf32>
    %244 = vector.shape_cast %243 : vector<8xf32> to vector<8x1xf32>
    %cst_85 = arith.constant 3.200000e+01 : f32
    %245 = vector.broadcast %cst_85 : f32 to vector<8x1xf32>
    %246 = arith.divf %244, %245 : vector<8x1xf32>
    %247 = vector.broadcast %246 : vector<8x1xf32> to vector<8x32xf32>
    %248 = arith.subf %242, %247 : vector<8x32xf32>
    %249 = arith.mulf %248, %248 : vector<8x32xf32>
    %cst_86 = arith.constant dense<0.000000e+00> : vector<8xf32>
    %250 = vector.multi_reduction <add>, %249, %cst_86 [1] : vector<8x32xf32> to vector<8xf32>
    %251 = vector.shape_cast %250 : vector<8xf32> to vector<8x1xf32>
    %cst_87 = arith.constant 3.200000e+01 : f32
    %252 = vector.broadcast %cst_87 : f32 to vector<8x1xf32>
    %253 = arith.divf %251, %252 : vector<8x1xf32>
    %254 = vector.broadcast %246 : vector<8x1xf32> to vector<8x32xf32>
    %255 = arith.subf %242, %254 : vector<8x32xf32>
    %cst_88 = arith.constant 9.99999996E-13 : f32
    %256 = vector.broadcast %cst_88 : f32 to vector<8x1xf32>
    %257 = arith.addf %253, %256 : vector<8x1xf32>
    %258 = math.rsqrt %257 : vector<8x1xf32>
    %259 = vector.broadcast %258 : vector<8x1xf32> to vector<8x32xf32>
    %260 = arith.mulf %255, %259 : vector<8x32xf32>
    %261 = vector.broadcast %166 : vector<1x32xf32> to vector<8x32xf32>
    %262 = arith.mulf %260, %261 : vector<8x32xf32>
    %263 = vector.broadcast %167 : vector<1x32xf32> to vector<8x32xf32>
    %264 = arith.addf %262, %263 : vector<8x32xf32>
    %cst_89 = arith.constant dense<0.000000e+00> : vector<8x64xf32>
    %265 = tpu.matmul %264, %159, %cst_89 {dimension_numbers = #tpu.dot_dimension_numbers<[1], [0], [0], [1], [0, 0, 1, 1], [], []>} : vector<8x32xf32>, vector<32x64xf32>, vector<8x64xf32> -> vector<8x64xf32>
    %266 = vector.broadcast %168 : vector<1x64xf32> to vector<8x64xf32>
    %267 = arith.addf %265, %266 : vector<8x64xf32>
    %cst_90 = arith.constant 5.000000e-01 : f32
    %268 = vector.broadcast %cst_90 : f32 to vector<8x64xf32>
    %269 = arith.mulf %268, %267 : vector<8x64xf32>
    %cst_91 = arith.constant 0.707106769 : f32
    %270 = vector.broadcast %cst_91 : f32 to vector<8x64xf32>
    %271 = arith.mulf %267, %270 : vector<8x64xf32>
    %272 = math.erf %271 : vector<8x64xf32>
    %cst_92 = arith.constant 1.000000e+00 : f32
    %273 = vector.broadcast %cst_92 : f32 to vector<8x64xf32>
    %274 = arith.addf %273, %272 : vector<8x64xf32>
    %275 = arith.mulf %269, %274 : vector<8x64xf32>
    %cst_93 = arith.constant dense<0.000000e+00> : vector<8x32xf32>
    %276 = tpu.matmul %275, %161, %cst_93 {dimension_numbers = #tpu.dot_dimension_numbers<[1], [0], [0], [1], [0, 0, 1, 1], [], []>} : vector<8x64xf32>, vector<64x32xf32>, vector<8x32xf32> -> vector<8x32xf32>
    %277 = vector.broadcast %169 : vector<1x32xf32> to vector<8x32xf32>
    %278 = arith.addf %276, %277 : vector<8x32xf32>
    %279 = arith.addf %278, %264 : vector<8x32xf32>
    %cst_94 = arith.constant dense<0.000000e+00> : vector<8xf32>
    %280 = vector.multi_reduction <add>, %279, %cst_94 [1] : vector<8x32xf32> to vector<8xf32>
    %281 = vector.shape_cast %280 : vector<8xf32> to vector<8x1xf32>
    %cst_95 = arith.constant 3.200000e+01 : f32
    %282 = vector.broadcast %cst_95 : f32 to vector<8x1xf32>
    %283 = arith.divf %281, %282 : vector<8x1xf32>
    %284 = vector.broadcast %283 : vector<8x1xf32> to vector<8x32xf32>
    %285 = arith.subf %279, %284 : vector<8x32xf32>
    %286 = arith.mulf %285, %285 : vector<8x32xf32>
    %cst_96 = arith.constant dense<0.000000e+00> : vector<8xf32>
    %287 = vector.multi_reduction <add>, %286, %cst_96 [1] : vector<8x32xf32> to vector<8xf32>
    %288 = vector.shape_cast %287 : vector<8xf32> to vector<8x1xf32>
    %cst_97 = arith.constant 3.200000e+01 : f32
    %289 = vector.broadcast %cst_97 : f32 to vector<8x1xf32>
    %290 = arith.divf %288, %289 : vector<8x1xf32>
    %291 = vector.broadcast %283 : vector<8x1xf32> to vector<8x32xf32>
    %292 = arith.subf %279, %291 : vector<8x32xf32>
    %cst_98 = arith.constant 9.99999996E-13 : f32
    %293 = vector.broadcast %cst_98 : f32 to vector<8x1xf32>
    %294 = arith.addf %290, %293 : vector<8x1xf32>
    %295 = math.rsqrt %294 : vector<8x1xf32>
    %296 = vector.broadcast %295 : vector<8x1xf32> to vector<8x32xf32>
    %297 = arith.mulf %292, %296 : vector<8x32xf32>
    %298 = vector.broadcast %170 : vector<1x32xf32> to vector<8x32xf32>
    %299 = arith.mulf %297, %298 : vector<8x32xf32>
    %300 = vector.broadcast %171 : vector<1x32xf32> to vector<8x32xf32>
    %301 = arith.addf %299, %300 : vector<8x32xf32>
    %c0_99 = arith.constant 0 : index
    %c0_100 = arith.constant 0 : index
    %302 = vector.load %arg7[%c0_99, %c0_100] : memref<8x32xf32, #tpu.memory_space<vmem>>, vector<8x32xf32>
    tpu.vector_store %arg7[%c0_99, %c0_100], %301 {strides = array<i32>} : memref<8x32xf32, #tpu.memory_space<vmem>>, vector<8x32xf32>,
    return
  }
}

</mosaic_0001>

<bundles_post_ra>
// kernel: tpu_custom_call.1
= control target key start
LH: loop header
LB: loop body
LE: loop exit
PB: predicated region body
PF: predicated region fallthrough
CT: control target
= control target key end

     0   :  { %12 = vsyncpa [#allocation3], 0  ;;  %s3172_s0 = inlined_call_operand.hbm [shape: f32[8,32], index: 0, kind: input, shape index: {}]   ;;  %s3173_s1 = inlined_call_operand.hbm [shape: f32[8,8], index: 1, kind: input, shape index: {}]   ;;  %s3174_s2 = inlined_call_operand.vmem [shape: f32[2,32,96], index: 2, kind: input, shape index: {}]   ;;  %s3175_s3 = inlined_call_operand.vmem [shape: f32[2,32,32], index: 3, kind: input, shape index: {}]   ;;  %s3176_s4 = inlined_call_operand.vmem [shape: f32[2,32,64], index: 4, kind: input, shape index: {}]   ;;  %s3177_s5 = inlined_call_operand.vmem [shape: f32[2,64,32], index: 5, kind: input, shape index: {}]   ;;  %s3178_s6 = inlined_call_operand.hbm [shape: f32[2,8,128], index: 6, kind: input, shape index: {}]   ;;  %s3179_s7 = inlined_call_operand.hbm [shape: f32[8,32], index: 7, kind: output, shape index: {}]  }
   0x1   :  { %13 = vsyncpa [#allocation6], 0 }
   0x2   :  { %14 = vsyncpa [#allocation4], 0  ;;  %s2675_s24 = smov [#allocation5]   ;;  %s2676_s26 = smov [#allocation2]  }
   0x3   :  { %s31_s25 = sshll.u32 %s2675_s24, 4  ;;  %s21_s27 = sshll.u32 %s2676_s26, 4  ;;  %s32_s25 = int_to_ptr.vmem [resolvable:$true] %s31_s25  ;;  %s22_s27 = int_to_ptr.vmem [resolvable:$true] %s21_s27 }
   0x4   :  { %s2597_s28 = scalar_lea.vmem %s32_s25, 128  ;;  %p2602_p1 = scmp.lt.s32.totalorder %s32_s25, %s32_s25 }
   0x5   :  { %p2598_p0 = scmp.ne.s32.totalorder %s32_s25, %s2597_s28  ;;  %p2603_p2 = scmp.lt.s32.totalorder %s2597_s28, %s2597_s28 }
   0x7   :  { %p2604_p3 = por %p2603_p2, %p2602_p1 }
   0x9   :  { %p2605_p4 = pnand %p2604_p3, %p2598_p0 }
   0xb   :  { %2608 = shalt.err (!%p2605_p4)
}
   0xc   :  { %34 = dma.hbm_to_vmem [thread:$0]  %s3173_s1, 128, %s32_s25, [#allocation6]  }
   0xd   :  { %s2617_s8 = scalar_lea.vmem %s22_s27, 128  ;;  %p2622_p6 = scmp.lt.s32.totalorder %s22_s27, %s22_s27 }
   0xe   :  { %p2618_p5 = scmp.ne.s32.totalorder %s22_s27, %s2617_s8  ;;  %p2623_p7 = scmp.lt.s32.totalorder %s2617_s8, %s2617_s8 }
  0x10   :  { %p2624_p8 = por %p2623_p7, %p2622_p6 }
  0x12   :  { %p2625_p9 = pnand %p2624_p8, %p2618_p5 }
  0x14   :  { %2628 = shalt.err (!%p2625_p9)
}
  0x15   :  { %24 = dma.hbm_to_vmem [thread:$0]  %s3172_s0, 128, %s22_s27, [#allocation3]  }
  0x16   :  { %s2677_s11 = smov [#allocation7]  }
  0x17   :  { %s48_s12 = sshll.u32 %s2677_s11, 4  ;;  %s49_s12 = int_to_ptr.vmem [resolvable:$true] %s48_s12 }
  0x18   :  { %s2637_s13 = scalar_lea.vmem %s49_s12, 256  ;;  %p2642_p11 = scmp.lt.s32.totalorder %s49_s12, %s49_s12 }
  0x19   :  { %p2638_p10 = scmp.ne.s32.totalorder %s49_s12, %s2637_s13  ;;  %p2643_p12 = scmp.lt.s32.totalorder %s2637_s13, %s2637_s13 }
  0x1b   :  { %p2644_p13 = por %p2643_p12, %p2642_p11 }
  0x1d   :  { %p2645_p0 = pnand %p2644_p13, %p2638_p10 }
  0x1f   :  { %2648 = shalt.err (!%p2645_p0)
}
  0x20   :  { %s2678_s1 = smov 128   ;;  %s2679_s14 = smov 8  }
  0x21   :  { %54 = dma.hbm_to_vmem [thread:$0]  %s3178_s6, 256, %s49_s12, [#allocation6], %s2678_s1, %s2678_s1, %s2679_s14  }
  0x22   :  { %2669 = dma.done.wait [#allocation3], 128  }
  0x23   :  { %2670 = vsyncadd [#allocation3], 4294967168 }
  0x24   :  { %2671 = dma.done.wait [#allocation6], 384  }
  0x25   :  { %2672 = vsyncadd [#allocation6], 4294966912  ;;  %v2680_v0 = vmov 0.0   ;;  %vm2681_vm0 = vmmov 0   ;;  %v71_v1 = vld [vmem:[%s3174_s2 + $0x18] sm:$0xff]  ;;  %v70_v2 = vld [vmem:[%s3174_s2 + $0x10] sm:$0xff]  ;;  %v89_v6 = vlaneseq }
  0x26   :  { %2340 = vmatprep.subr.mxu1 %v2680_v0  ;;  %2348 = vmatprep.mubr.msk.f32.mxu1 %vm2681_vm0, %v2680_v0  ;;  %v69_v3 = vld [vmem:[%s3174_s2 + $0x8] sm:$0xff]  ;;  %v68_v4 = vld [vmem:[%s3174_s2] sm:$0xff]  ;;  %vm93_vm1 = vcmask 261120   ;;  %v2777_v9 = vld [vmem:[#allocation7] sm:$0xff]  ;;  %s2682_s23 = smov 120   ;;  %s2683_s24 = smov 96  }
  0x27   :  { %2361 = vmatprep.subr.mxu0 %v2680_v0  ;;  %2363 = vmatprep.mubr.msk.f32.mxu0 %vm2681_vm0, %v2680_v0  ;;  %v2766_v5 = vld [vmem:[#allocation2] sm:$0xff]  ;;  %v2774_v7 = vshrl.u32 %v89_v6, 7  ;;  %s2684_s25 = smov 80   ;;  %s2685_s26 = smov 88   ;;  %vm170_vm2 = vcmask 64512   ;;  %v65_v21 = vld [vmem:[#allocation5] sm:$0xff] }
  0x28   :  { %2341 = vmatpush3.msra.mxu1 %v71_v1  ;;  %s2686_s27 = smov 72   ;;  %s2687_s28 = smov 112   ;;  %v66_v22 = vsub.f32 1.0, %v65_v21  ;;  %vm840_vm3 = vcmask 130048   ;;  %vm842_vm4 = vcmask 195584   ;;  %vm1032_vm5 = vcmask 523264  }
  0x29   :  { %2342 = vmatprep.subr.mxu1 %v2680_v0  ;;  %v91_v8 = vsub.s32 0, %v2774_v7  ;;  %s2688_s29 = smov 104   ;;  %s2689_s30 = smov 56  }
  0x2a   :  { %2343 = vmatpush3.msra.mxu1 %v70_v2  ;;  %v2819_v23 = vmul.f32 -1e+30, %v66_v22  ;;  %s2690_s8 = smov 64   ;;  %s2691_s9 = smov 48   ;;  %v74_v22 = vld [vmem:[%s3175_s3 + $0x10] sm:$0xff] }
  0x2b   :  { %2344 = vmatprep.subr.mxu1 %v2680_v0  ;;  %v92_v10 = vrot.slane %v2777_v9, %v91_v8  ;;  %s2692_s10 = smov 40   ;;  %s2693_s6 = smov 16  }
  0x2c   :  { %2345 = vmatpush3.msra.mxu1 %v69_v3  ;;  %s2694_s18 = smov 24  }
  0x2d   :  { %2346 = vmatprep.subr.mxu1 %v2680_v0 }
  0x2e   :  { %2347 = vmatpush3.msra.mxu1 %v68_v4 }
  0x2f   :  { %2349 = vmatmul.mubr.msk.f32.vlgmr.msra.gmra.mxu1 %vm93_vm1, %v2766_v5  ;;  %2351 = vmatprep.subr.mxu1 %v2680_v0 }
  0x30   :  { %2353 = vmatprep.mubr.msk.f32.mxu1 %vm2681_vm0, %v2680_v0 }
  0xef   :  { %v163_v11 = vpop.f32.mrf.mxu1 }
  0xf0   :  { %v2782_v12 = vadd.f32 %v163_v11, %v92_v10 }
  0xf1   :  { %v2350_v13 = vpop.f32.mrf.mxu1 }
  0xf2   :  { %332 = vrot.lane.b32.xlu1 %v2782_v12, %s2682_s23  ;;  %168 = vrot.lane.b32.xlu0 %v2782_v12, %s2683_s24 }
  0xf6   :  { %499 = vrot.lane.b32.xlu1 %v2782_v12, %s2684_s25  ;;  %334 = vrot.lane.b32.xlu0 %v2782_v12, %s2685_s26 }
  0xfa   :  { %664 = vrot.lane.b32.xlu1 %v2782_v12, %s2686_s27  ;;  %497 = vrot.lane.b32.xlu0 %v2782_v12, %s2687_s28 }
  0xfe   :  { %662 = vrot.lane.b32.xlu0 %v2782_v12, %s2688_s29 }
 0x164   :  { %v333_v14 = vpop.permute.xlu1 %332  ;;  %v169_v15 = vpop.permute.xlu0 %168 }
 0x165   :  { %2352 = vmatpush3.xpose.msk.msra.mxu1 %vm170_vm2, %v169_v15 }
 0x166   :  { %2356 = vmatprep.subr.mxu1 %v2680_v0 }
 0x168   :  { %2354 = vmatmul.mubr.msk.f32.vlgmr.msra.gmra.mxu1 %vm170_vm2, %v2782_v12  ;;  %v335_v16 = vpop.permute.xlu0 %334  ;;  %v500_v17 = vpop.permute.xlu1 %499 }
 0x169   :  { %2362 = vmatpush3.xpose.msk.msra.mxu0 %vm170_vm2, %v335_v16  ;;  %2358 = vmatprep.mubr.msk.f32.mxu1 %vm2681_vm0, %v2680_v0 }
 0x16a   :  { %2371 = vmatprep.subr.mxu0 %v2680_v0 }
 0x16c   :  { %2364 = vmatmul.mubr.msk.f32.vlgmr.msra.gmra.mxu0 %vm170_vm2, %v333_v14  ;;  %v498_v18 = vpop.permute.xlu0 %497  ;;  %v665_v19 = vpop.permute.xlu1 %664 }
 0x16d   :  { %2372 = vmatpush3.xpose.msk.msra.mxu0 %vm170_vm2, %v500_v17  ;;  %2373 = vmatprep.mubr.msk.f32.mxu0 %vm2681_vm0, %v2680_v0  ;;  %v75_v17 = vld [vmem:[%s3175_s3 + $0x18] sm:$0xff] }
 0x16e   :  { %2381 = vmatprep.subr.mxu0 %v2680_v0 }
 0x170   :  { %2374 = vmatmul.mubr.msk.f32.vlgmr.msra.gmra.mxu0 %vm170_vm2, %v498_v18  ;;  %v663_v20 = vpop.permute.xlu0 %662 }
 0x171   :  { %2382 = vmatpush3.xpose.msk.msra.mxu0 %vm170_vm2, %v665_v19  ;;  %2383 = vmatprep.mubr.msk.f32.mxu0 %vm2681_vm0, %v2680_v0 }
 0x172   :  { %2391 = vmatprep.subr.mxu0 %v2680_v0 }
 0x174   :  { %2384 = vmatmul.mubr.msk.f32.vlgmr.msra.gmra.mxu0 %vm170_vm2, %v663_v20 }
 0x175   :  { %2399 = vmatprep.mubr.msk.f32.mxu0 %vm2681_vm0, %v2680_v0  ;;  %2392 = vmatpush3.msra.mxu0 %v75_v17 }
 0x176   :  { %2393 = vmatprep.subr.mxu0 %v2680_v0 }
 0x177   :  { %2394 = vmatpush3.msra.mxu0 %v74_v22 }
 0x178   :  { %2395 = vmatprep.subr.mxu0 %v2680_v0 }
 0x228   :  { %v241_v24 = vpop.f32.mrf.mxu1 }
 0x229   :  { %v242_v25 = vadd.f32 %v241_v24, %v2819_v23  ;;  %v73_v24 = vld [vmem:[%s3175_s3 + $0x8] sm:$0xff] }
 0x22a   :  { %v2355_v26 = vpop.f32.mrf.mxu1  ;;  %2396 = vmatpush3.msra.mxu0 %v73_v24 }
 0x22b   :  { %v245_v27 = vsel %vm170_vm2, %v242_v25, -inf  ;;  %2397 = vmatprep.subr.mxu0 %v2680_v0 }
 0x22c   :  { %v406_v28 = vpop.f32.mrf.mxu0  ;;  %246 = vmax.xlane.f32.xlu1 %v245_v27 }
 0x22d   :  { %v407_v29 = vadd.f32 %v406_v28, %v2819_v23 }
 0x22e   :  { %v2365_v30 = vpop.f32.mrf.mxu0 }
 0x22f   :  { %v410_v31 = vsel %vm170_vm2, %v407_v29, -inf }
 0x230   :  { %411 = vmax.xlane.f32.xlu0 %v410_v31  ;;  %v571_v32 = vpop.f32.mrf.mxu0 }
 0x231   :  { %v572_v33 = vadd.f32 %v571_v32, %v2819_v23 }
 0x232   :  { %v2375_v34 = vpop.f32.mrf.mxu0 }
 0x233   :  { %v575_v35 = vsel %vm170_vm2, %v572_v33, -inf }
 0x234   :  { %576 = vmax.xlane.f32.xlu0 %v575_v35  ;;  %v736_v36 = vpop.f32.mrf.mxu0 }
 0x235   :  { %v737_v37 = vadd.f32 %v736_v36, %v2819_v23  ;;  %v846_v36 = vsub.s32 1, %v2774_v7 }
 0x236   :  { %v2385_v38 = vpop.f32.mrf.mxu0 }
 0x237   :  { %v740_v39 = vsel %vm170_vm2, %v737_v37, -inf }
 0x238   :  { %741 = vmax.xlane.f32.xlu1 %v740_v39 }
 0x249   :  { %421 = vrot.lane.b32.xlu1 %v2782_v12, %s2689_s30 }
 0x2b5   :  { %v247_v40 = vpop.xlane.xlu1 %246 }
 0x2b6   :  { %v248_v41 = vsub.f32 %v242_v25, %v247_v40  ;;  %v72_v25 = vld [vmem:[%s3175_s3] sm:$0xff] }
 0x2b7   :  { %2398 = vmatpush3.msra.mxu0 %v72_v25 }
 0x2b8   :  { %v249_v42 = vmul.f32 1.442695, %v248_v41  ;;  %2413 = vmatprep.subr.mxu0 %v2680_v0 }
 0x2b9   :  { %v412_v43 = vpop.xlane.xlu0 %411 }
 0x2ba   :  { %2545 = vpow2.f32 %v249_v42  ;;  %v413_v44 = vsub.f32 %v407_v29, %v412_v43 }
 0x2bc   :  { %v414_v45 = vmul.f32 1.442695, %v413_v44 }
 0x2bd   :  { %v577_v55 = vpop.xlane.xlu0 %576 }
 0x2be   :  { %2547 = vpow2.f32 %v414_v45  ;;  %v578_v56 = vsub.f32 %v572_v33, %v577_v55  ;;  %v943_v55 = vsub.s32 3, %v2774_v7 }
 0x2c0   :  { %v579_v57 = vmul.f32 1.442695, %v578_v56 }
 0x2c1   :  { %v742_v46 = vpop.xlane.xlu1 %741 }
 0x2c2   :  { %v743_v47 = vsub.f32 %v737_v37, %v742_v46  ;;  %v847_v37 = vrot.slane %v2777_v9, %v846_v36 }
 0x2c4   :  { %v744_v48 = vmul.f32 1.442695, %v743_v47 }
 0x2c5   :  { %v422_v60 = vpop.permute.xlu1 %421 }
 0x2c6   :  { %2549 = vpow2.f32 %v744_v48  ;;  %v79_v48 = vld [vmem:[%s3176_s4 + $0x18] sm:$0xff] }
 0x2c7   :  { %v2546_v49 = vpop.eup %2545  ;;  %2551 = vpow2.f32 %v579_v57 }
 0x2c8   :  { %v251_v50 = vsel %vm170_vm2, %v2546_v49, 0.0 }
 0x2c9   :  { %252 = vadd.xlane.f32.xlu0 %v251_v50  ;;  %v76_v50 = vld [vmem:[%s3176_s4] sm:$0xff] }
 0x2cb   :  { %v2548_v51 = vpop.eup %2547 }
 0x2cc   :  { %v416_v52 = vsel %vm170_vm2, %v2548_v51, 0.0 }
 0x2cd   :  { %417 = vadd.xlane.f32.xlu1 %v416_v52 }
 0x2d3   :  { %v2550_v53 = vpop.eup %2549 }
 0x2d4   :  { %v746_v54 = vsel %vm170_vm2, %v2550_v53, 0.0  ;;  %v2552_v58 = vpop.eup %2551 }
 0x2d5   :  { %747 = vadd.xlane.f32.xlu1 %v746_v54  ;;  %v581_v59 = vsel %vm170_vm2, %v2552_v58, 0.0  ;;  %v938_v54 = vsub.s32 2, %v2774_v7 }
 0x2d7   :  { %v939_v56 = vrot.slane %v2777_v9, %v938_v54 }
 0x2df   :  { %256 = vrot.lane.b32.xlu0 %v2782_v12, %s2690_s8 }
 0x2e6   :  { %586 = vrot.lane.b32.xlu1 %v2782_v12, %s2691_s9 }
 0x2fe   :  { %582 = vadd.xlane.f32.xlu0 %v581_v59  ;;  %v944_v59 = vrot.slane %v2777_v9, %v943_v55 }
 0x314   :  { %751 = vrot.lane.b32.xlu0 %v2782_v12, %s2692_s10 }
 0x352   :  { %v253_v61 = vpop.xlane.xlu0 %252 }
 0x353   :  { %2553 = vrcp.f32 %v253_v61 }
 0x356   :  { %v257_v62 = vpop.permute.xlu0 %256  ;;  %v418_v63 = vpop.xlane.xlu1 %417 }
 0x357   :  { %2555 = vrcp.f32 %v418_v63  ;;  %2357 = vmatpush3.msra.mxu1 %v257_v62  ;;  %v87_v62 = vld [vmem:[%s3177_s5 + $0x38] sm:$0xff]  ;;  %v86_v63 = vld [vmem:[%s3177_s5 + $0x30] sm:$0xff] }
 0x358   :  { %2366 = vmatprep.subr.mxu1 %v2680_v0 }
 0x35e   :  { %v748_v2 = vpop.xlane.xlu1 %747 }
 0x360   :  { %v2554_v1 = vpop.eup %2553 }
 0x361   :  { %v255_v3 = vmul.f32 %v2554_v1, %v2546_v49  ;;  %v78_v49 = vld [vmem:[%s3176_s4 + $0x10] sm:$0xff]  ;;  %v85_v1 = vld [vmem:[%s3177_s5 + $0x28] sm:$0xff] }
 0x362   :  { %v587_v10 = vpop.permute.xlu1 %586 }
 0x363   :  { %2359 = vmatmul.mubr.msk.f32.vlgmr.msra.gmra.mxu1 %vm170_vm2, %v255_v3  ;;  %v83_v3 = vld [vmem:[%s3177_s5 + $0x18] sm:$0xff] }
 0x364   :  { %v2556_v4 = vpop.eup %2555  ;;  %2367 = vmatpush3.msra.mxu1 %v422_v60  ;;  %2368 = vmatprep.mubr.msk.f32.mxu1 %vm2681_vm0, %v2680_v0 }
 0x365   :  { %2376 = vmatprep.subr.mxu1 %v2680_v0  ;;  %v420_v6 = vmul.f32 %v2556_v4, %v2548_v51  ;;  %v82_v4 = vld [vmem:[%s3177_s5 + $0x10] sm:$0xff] }
 0x367   :  { %2369 = vmatmul.mubr.msk.f32.vlgmr.msra.gmra.mxu1 %vm170_vm2, %v420_v6  ;;  %v81_v6 = vld [vmem:[%s3177_s5 + $0x8] sm:$0xff] }
 0x368   :  { %2377 = vmatpush3.msra.mxu1 %v587_v10  ;;  %2378 = vmatprep.mubr.msk.f32.mxu1 %vm2681_vm0, %v2680_v0  ;;  %v80_v10 = vld [vmem:[%s3177_s5] sm:$0xff] }
 0x369   :  { %2386 = vmatprep.subr.mxu1 %v2680_v0 }
 0x387   :  { %v583_v11 = vpop.xlane.xlu0 %582 }
 0x388   :  { %2557 = vrcp.f32 %v583_v11  ;;  %v948_v11 = vsub.s32 4, %v2774_v7 }
 0x389   :  { %2559 = vrcp.f32 %v748_v2  ;;  %v84_v2 = vld [vmem:[%s3177_s5 + $0x20] sm:$0xff] }
 0x38b   :  { %v752_v15 = vpop.permute.xlu0 %751 }
 0x395   :  { %v2558_v12 = vpop.eup %2557 }
 0x396   :  { %v585_v13 = vmul.f32 %v2558_v12, %v2552_v58  ;;  %v2560_v14 = vpop.eup %2559  ;;  %v949_v12 = vrot.slane %v2777_v9, %v948_v11 }
 0x397   :  { %v750_v16 = vmul.f32 %v2560_v14, %v2550_v53 }
 0x398   :  { %2379 = vmatmul.mubr.msk.f32.vlgmr.msra.gmra.mxu1 %vm170_vm2, %v585_v13 }
 0x399   :  { %2387 = vmatpush3.msra.mxu1 %v752_v15  ;;  %2388 = vmatprep.mubr.msk.f32.mxu1 %vm2681_vm0, %v2680_v0 }
 0x39a   :  { %2402 = vmatprep.subr.mxu1 %v2680_v0 }
 0x39c   :  { %2389 = vmatmul.mubr.msk.f32.vlgmr.msra.gmra.mxu1 %vm170_vm2, %v750_v16 }
 0x39d   :  { %2410 = vmatprep.mubr.msk.f32.mxu1 %vm2681_vm0, %v2680_v0  ;;  %2403 = vmatpush3.msra.mxu1 %v79_v48 }
 0x39e   :  { %2404 = vmatprep.subr.mxu1 %v2680_v0 }
 0x39f   :  { %2405 = vmatpush3.msra.mxu1 %v78_v49 }
 0x3a0   :  { %2406 = vmatprep.subr.mxu1 %v2680_v0 }
 0x423   :  { %v328_v18 = vpop.f32.mrf.mxu1 }
 0x425   :  { %v2360_v19 = vpop.f32.mrf.mxu1 }
 0x427   :  { %v493_v20 = vpop.f32.mrf.mxu1 }
 0x428   :  { %828 = vrot.lane.b32.xlu1 %v493_v20, %s2679_s14 }
 0x429   :  { %v2370_v21 = vpop.f32.mrf.mxu1 }
 0x42a   :  { %v1030_v21 = vsub.s32 5, %v2774_v7 }
 0x42c   :  { %v1031_v22 = vrot.slane %v2777_v9, %v1030_v21 }
 0x458   :  { %v658_v26 = vpop.f32.mrf.mxu1 }
 0x459   :  { %832 = vrot.lane.b32.xlu0 %v658_v26, %s2693_s6 }
 0x45a   :  { %v2380_v27 = vpop.f32.mrf.mxu1 }
 0x45c   :  { %v823_v28 = vpop.f32.mrf.mxu1 }
 0x45d   :  { %836 = vrot.lane.b32.xlu1 %v823_v28, %s2694_s18 }
 0x45e   :  { %v2390_v29 = vpop.f32.mrf.mxu1 }
 0x49a   :  { %v829_v30 = vpop.permute.xlu1 %828 }
 0x49b   :  { %v839_v32 = vsel %vm170_vm2, %v328_v18, %v829_v30 }
 0x4cb   :  { %v833_v31 = vpop.permute.xlu0 %832 }
 0x4cc   :  { %v841_v33 = vsel %vm840_vm3, %v839_v32, %v833_v31 }
 0x4cf   :  { %v837_v34 = vpop.permute.xlu1 %836 }
 0x4d0   :  { %v843_v35 = vsel %vm842_vm4, %v841_v33, %v837_v34  ;;  %v2227_v34 = vld [vmem:[%s3174_s2 + $0x38] sm:$0xff] }
 0x4d1   :  { %2400 = vmatmul.mubr.msk.f32.vlgmr.msra.gmra.mxu0 %vm93_vm1, %v843_v35  ;;  %v2226_v35 = vld [vmem:[%s3174_s2 + $0x30] sm:$0xff] }
 0x4d2   :  { %2429 = vmatprep.mubr.msk.f32.mxu0 %vm2681_vm0, %v2680_v0  ;;  %2414 = vmatpush3.msra.mxu0 %v87_v62 }
 0x4d3   :  { %2415 = vmatprep.subr.mxu0 %v2680_v0 }
 0x4d4   :  { %2416 = vmatpush3.msra.mxu0 %v86_v63 }
 0x4d5   :  { %2417 = vmatprep.subr.mxu0 %v2680_v0 }
 0x4d6   :  { %2418 = vmatpush3.msra.mxu0 %v85_v1 }
 0x4d7   :  { %2419 = vmatprep.subr.mxu0 %v2680_v0 }
 0x4d8   :  { %2420 = vmatpush3.msra.mxu0 %v84_v2 }
 0x4d9   :  { %2421 = vmatprep.subr.mxu0 %v2680_v0 }
 0x4da   :  { %2422 = vmatpush3.msra.mxu0 %v83_v3 }
 0x4db   :  { %2423 = vmatprep.subr.mxu0 %v2680_v0 }
 0x4dc   :  { %2424 = vmatpush3.msra.mxu0 %v82_v4 }
 0x4dd   :  { %2425 = vmatprep.subr.mxu0 %v2680_v0 }
 0x4de   :  { %2426 = vmatpush3.msra.mxu0 %v81_v6 }
 0x4df   :  { %2427 = vmatprep.subr.mxu0 %v2680_v0 }
 0x4e0   :  { %2428 = vmatpush3.msra.mxu0 %v80_v10 }
 0x4e1   :  { %2453 = vmatprep.subr.mxu0 %v2680_v0 }
 0x591   :  { %v917_v38 = vpop.f32.mrf.mxu0 }
 0x592   :  { %v918_v39 = vadd.f32 %v917_v38, %v847_v37  ;;  %v2225_v37 = vld [vmem:[%s3174_s2 + $0x28] sm:$0xff]  ;;  %v2224_v38 = vld [vmem:[%s3174_s2 + $0x20] sm:$0xff] }
 0x593   :  { %v2401_v40 = vpop.f32.mrf.mxu0 }
 0x594   :  { %v921_v41 = vadd.f32 %v918_v39, %v2766_v5  ;;  %v77_v5 = vld [vmem:[%s3176_s4 + $0x8] sm:$0xff] }
 0x595   :  { %2407 = vmatpush3.msra.mxu1 %v77_v5  ;;  %v2991_v5 = vld [vmem:[#allocation7 + $0x8] sm:$0xff] }
 0x596   :  { %v922_v42 = vsel %vm93_vm1, %v921_v41, 0.0  ;;  %2408 = vmatprep.subr.mxu1 %v2680_v0 }
 0x597   :  { %923 = vadd.xlane.f32.xlu0 %v922_v42  ;;  %2409 = vmatpush3.msra.mxu1 %v76_v50  ;;  %v1122_v42 = vsub.s32 6, %v2774_v7  ;;  %v1159_v50 = vrot.slane %v2991_v5, %v91_v8 }
 0x598   :  { %2432 = vmatprep.subr.mxu1 %v2680_v0 }
 0x620   :  { %v924_v43 = vpop.xlane.xlu0 %923 }
 0x621   :  { %v926_v44 = vmul.f32 0.03125, %v924_v43  ;;  %v1127_v43 = vsub.s32 7, %v2774_v7 }
 0x623   :  { %v927_v45 = vsub.f32 %v921_v41, %v926_v44  ;;  %v1123_v44 = vrot.slane %v2777_v9, %v1122_v42 }
 0x625   :  { %v928_v46 = vmul.f32 %v927_v45, %v927_v45 }
 0x627   :  { %v929_v47 = vsel %vm93_vm1, %v928_v46, 0.0 }
 0x628   :  { %930 = vadd.xlane.f32.xlu1 %v929_v47  ;;  %v1128_v47 = vrot.slane %v2777_v9, %v1127_v43 }
 0x6b1   :  { %v931_v51 = vpop.xlane.xlu1 %930 }
 0x6b2   :  { %v932_v52 = vmul.f32 0.03125, %v931_v51 }
 0x6b4   :  { %v933_v53 = vadd.f32 1e-12, %v932_v52 }
 0x6b6   :  { %2561 = vrsqrt.f32 %v933_v53 }
 0x6c3   :  { %v2562_v57 = vpop.eup %2561 }
 0x6c4   :  { %v935_v58 = vmul.f32 %v2562_v57, %v927_v45 }
 0x6c6   :  { %v940_v60 = vmul.f32 %v939_v56, %v935_v58 }
 0x6c8   :  { %v945_v61 = vadd.f32 %v944_v59, %v940_v60 }
 0x6ca   :  { %2411 = vmatmul.mubr.msk.f32.vlgmr.msra.gmra.mxu1 %vm93_vm1, %v945_v61 }
 0x6cb   :  { %2440 = vmatprep.mubr.msk.f32.mxu1 %vm2681_vm0, %v2680_v0  ;;  %2433 = vmatpush3.msra.mxu1 %v2227_v34 }
 0x6cc   :  { %2434 = vmatprep.subr.mxu1 %v2680_v0 }
 0x6cd   :  { %2435 = vmatpush3.msra.mxu1 %v2226_v35 }
 0x6ce   :  { %2436 = vmatprep.subr.mxu1 %v2680_v0 }
 0x6cf   :  { %2437 = vmatpush3.msra.mxu1 %v2225_v37 }
 0x6d0   :  { %2438 = vmatprep.subr.mxu1 %v2680_v0 }
 0x6d1   :  { %2439 = vmatpush3.msra.mxu1 %v2224_v38 }
 0x6d2   :  { %2443 = vmatprep.subr.mxu1 %v2680_v0 }
 0x78a   :  { %v1019_v13 = vpop.f32.mrf.mxu1 }
 0x78b   :  { %v1020_v14 = vadd.f32 %v1019_v13, %v949_v12 }
 0x78c   :  { %v2412_v15 = vpop.f32.mrf.mxu1 }
 0x78d   :  { %v1024_v16 = vmul.f32 0.70710677, %v1020_v14  ;;  %v1023_v18 = vmul.f32 0.5, %v1020_v14 }
 0x78f   :  { %2563 = verf.f32 %v1024_v16 }
 0x79c   :  { %v2564_v17 = vpop.eup %2563 }
 0x79d   :  { %v1026_v19 = vadd.f32 1.0, %v2564_v17 }
 0x79f   :  { %v1027_v20 = vmul.f32 %v1026_v19, %v1023_v18 }
 0x7a1   :  { %2430 = vmatmul.mubr.msk.f32.vlgmr.msra.gmra.mxu0 %vm1032_vm5, %v1027_v20 }
 0x7a2   :  { %2455 = vmatprep.mubr.msk.f32.mxu0 %vm2681_vm0, %v2680_v0 }
 0x861   :  { %v1102_v24 = vpop.f32.mrf.mxu0 }
 0x862   :  { %v1103_v25 = vadd.f32 %v1102_v24, %v1031_v22 }
 0x863   :  { %v2431_v26 = vpop.f32.mrf.mxu0 }
 0x864   :  { %v1106_v27 = vadd.f32 %v1103_v25, %v945_v61 }
 0x866   :  { %v1107_v28 = vsel %vm93_vm1, %v1106_v27, 0.0 }
 0x867   :  { %1108 = vadd.xlane.f32.xlu0 %v1107_v28 }
 0x8f0   :  { %v1109_v29 = vpop.xlane.xlu0 %1108 }
 0x8f1   :  { %v1110_v30 = vmul.f32 0.03125, %v1109_v29 }
 0x8f3   :  { %v1111_v31 = vsub.f32 %v1106_v27, %v1110_v30 }
 0x8f5   :  { %v1112_v32 = vmul.f32 %v1111_v31, %v1111_v31 }
 0x8f7   :  { %v1113_v33 = vsel %vm93_vm1, %v1112_v32, 0.0 }
 0x8f8   :  { %1114 = vadd.xlane.f32.xlu0 %v1113_v33 }
 0x981   :  { %v1115_v39 = vpop.xlane.xlu0 %1114 }
 0x982   :  { %v1116_v40 = vmul.f32 0.03125, %v1115_v39 }
 0x984   :  { %v1117_v41 = vadd.f32 1e-12, %v1116_v40 }
 0x986   :  { %2565 = vrsqrt.f32 %v1117_v41 }
 0x993   :  { %v2566_v45 = vpop.eup %2565 }
 0x994   :  { %v1119_v46 = vmul.f32 %v2566_v45, %v1111_v31 }
 0x996   :  { %v1124_v48 = vmul.f32 %v1123_v44, %v1119_v46 }
 0x998   :  { %v2985_v49 = vadd.f32 %v1128_v47, %v1124_v48 }
 0x99a   :  { %2441 = vmatmul.mubr.msk.f32.vlgmr.msra.gmra.mxu1 %vm93_vm1, %v2985_v49 }
 0x99b   :  { %2445 = vmatprep.mubr.msk.f32.mxu1 %vm2681_vm0, %v2680_v0 }
 0xa5a   :  { %v1229_v51 = vpop.f32.mrf.mxu1 }
 0xa5b   :  { %v2996_v52 = vadd.f32 %v1229_v51, %v1159_v50 }
 0xa5c   :  { %v2442_v53 = vpop.f32.mrf.mxu1 }
 0xa5d   :  { %1399 = vrot.lane.b32.xlu0 %v2996_v52, %s2685_s26  ;;  %1234 = vrot.lane.b32.xlu1 %v2996_v52, %s2683_s24 }
 0xa61   :  { %1562 = vrot.lane.b32.xlu0 %v2996_v52, %s2687_s28  ;;  %1397 = vrot.lane.b32.xlu1 %v2996_v52, %s2682_s23 }
 0xa65   :  { %1727 = vrot.lane.b32.xlu0 %v2996_v52, %s2688_s29  ;;  %1564 = vrot.lane.b32.xlu1 %v2996_v52, %s2684_s25 }
 0xa69   :  { %1729 = vrot.lane.b32.xlu1 %v2996_v52, %s2686_s27 }
 0xacf   :  { %v1400_v8 = vpop.permute.xlu0 %1399  ;;  %v1235_v9 = vpop.permute.xlu1 %1234 }
 0xad0   :  { %2444 = vmatpush3.xpose.msk.msra.mxu1 %vm170_vm2, %v1235_v9  ;;  %2454 = vmatpush3.xpose.msk.msra.mxu0 %vm170_vm2, %v1400_v8 }
 0xad1   :  { %2463 = vmatprep.subr.mxu0 %v2680_v0  ;;  %2448 = vmatprep.subr.mxu1 %v2680_v0 }
 0xad3   :  { %2446 = vmatmul.mubr.msk.f32.vlgmr.msra.gmra.mxu1 %vm170_vm2, %v2996_v52  ;;  %v1398_v56 = vpop.permute.xlu1 %1397  ;;  %v1563_v58 = vpop.permute.xlu0 %1562 }
 0xad4   :  { %2456 = vmatmul.mubr.msk.f32.vlgmr.msra.gmra.mxu0 %vm170_vm2, %v1398_v56  ;;  %2450 = vmatprep.mubr.msk.f32.mxu1 %vm2681_vm0, %v2680_v0 }
 0xad5   :  { %2465 = vmatprep.mubr.msk.f32.mxu0 %vm2681_vm0, %v2680_v0 }
 0xad7   :  { %v1565_v57 = vpop.permute.xlu1 %1564  ;;  %v1728_v60 = vpop.permute.xlu0 %1727 }
 0xad8   :  { %2464 = vmatpush3.xpose.msk.msra.mxu0 %vm170_vm2, %v1565_v57 }
 0xad9   :  { %2473 = vmatprep.subr.mxu0 %v2680_v0 }
 0xadb   :  { %2466 = vmatmul.mubr.msk.f32.vlgmr.msra.gmra.mxu0 %vm170_vm2, %v1563_v58  ;;  %v1730_v59 = vpop.permute.xlu1 %1729 }
 0xadc   :  { %2474 = vmatpush3.xpose.msk.msra.mxu0 %vm170_vm2, %v1730_v59  ;;  %2475 = vmatprep.mubr.msk.f32.mxu0 %vm2681_vm0, %v2680_v0 }
 0xadd   :  { %2483 = vmatprep.subr.mxu0 %v2680_v0 }
 0xadf   :  { %2476 = vmatmul.mubr.msk.f32.vlgmr.msra.gmra.mxu0 %vm170_vm2, %v1728_v60  ;;  %v2231_v60 = vld [vmem:[%s3175_s3 + $0x38] sm:$0xff] }
 0xae0   :  { %2491 = vmatprep.mubr.msk.f32.mxu0 %vm2681_vm0, %v2680_v0  ;;  %2484 = vmatpush3.msra.mxu0 %v2231_v60 }
 0xae1   :  { %2485 = vmatprep.subr.mxu0 %v2680_v0 }
 0xb93   :  { %v1306_v61 = vpop.f32.mrf.mxu1 }
 0xb94   :  { %v1307_v62 = vadd.f32 %v1306_v61, %v2819_v23  ;;  %v1471_v63 = vpop.f32.mrf.mxu0 }
 0xb95   :  { %v1472_v1 = vadd.f32 %v1471_v63, %v2819_v23  ;;  %v2447_v2 = vpop.f32.mrf.mxu1 }
 0xb96   :  { %v2457_v3 = vpop.f32.mrf.mxu0  ;;  %v1310_v4 = vsel %vm170_vm2, %v1307_v62, -inf  ;;  %v2230_v2 = vld [vmem:[%s3175_s3 + $0x30] sm:$0xff] }
 0xb97   :  { %1311 = vmax.xlane.f32.xlu1 %v1310_v4  ;;  %v1475_v6 = vsel %vm170_vm2, %v1472_v1, -inf  ;;  %v2229_v3 = vld [vmem:[%s3175_s3 + $0x28] sm:$0xff]  ;;  %2486 = vmatpush3.msra.mxu0 %v2230_v2  ;;  %v2228_v4 = vld [vmem:[%s3175_s3 + $0x20] sm:$0xff] }
 0xb98   :  { %1476 = vmax.xlane.f32.xlu0 %v1475_v6  ;;  %2487 = vmatprep.subr.mxu0 %v2680_v0 }
 0xb99   :  { %2488 = vmatpush3.msra.mxu0 %v2229_v3 }
 0xb9a   :  { %2489 = vmatprep.subr.mxu0 %v2680_v0 }
 0xb9b   :  { %v1636_v10 = vpop.f32.mrf.mxu0  ;;  %2490 = vmatpush3.msra.mxu0 %v2228_v4 }
 0xb9c   :  { %v1637_v12 = vadd.f32 %v1636_v10, %v2819_v23  ;;  %2505 = vmatprep.subr.mxu0 %v2680_v0 }
 0xb9d   :  { %v2467_v13 = vpop.f32.mrf.mxu0 }
 0xb9e   :  { %v1640_v14 = vsel %vm170_vm2, %v1637_v12, -inf }
 0xb9f   :  { %1641 = vmax.xlane.f32.xlu0 %v1640_v14  ;;  %v1801_v15 = vpop.f32.mrf.mxu0 }
 0xba0   :  { %v1802_v16 = vadd.f32 %v1801_v15, %v2819_v23 }
 0xba1   :  { %v2477_v17 = vpop.f32.mrf.mxu0 }
 0xba2   :  { %v1805_v18 = vsel %vm170_vm2, %v1802_v16, -inf }
 0xba3   :  { %1806 = vmax.xlane.f32.xlu1 %v1805_v18 }
 0xbb4   :  { %1486 = vrot.lane.b32.xlu1 %v2996_v52, %s2689_s30 }
 0xc20   :  { %v1312_v19 = vpop.xlane.xlu1 %1311 }
 0xc21   :  { %v1313_v20 = vsub.f32 %v1307_v62, %v1312_v19  ;;  %v1477_v22 = vpop.xlane.xlu0 %1476 }
 0xc22   :  { %v1478_v24 = vsub.f32 %v1472_v1, %v1477_v22 }
 0xc23   :  { %v1314_v25 = vmul.f32 1.442695, %v1313_v20  ;;  %v1910_v20 = vrot.slane %v2991_v5, %v846_v36  ;;  %v2234_v36 = vld [vmem:[%s3176_s4 + $0x30] sm:$0xff] }
 0xc24   :  { %v1479_v26 = vmul.f32 1.442695, %v1478_v24 }
 0xc25   :  { %2567 = vpow2.f32 %v1314_v25 }
 0xc26   :  { %2569 = vpow2.f32 %v1479_v26 }
 0xc28   :  { %v1642_v35 = vpop.xlane.xlu0 %1641 }
 0xc29   :  { %v1643_v37 = vsub.f32 %v1637_v12, %v1642_v35 }
 0xc2b   :  { %v1644_v38 = vmul.f32 1.442695, %v1643_v37 }
 0xc2c   :  { %v1807_v27 = vpop.xlane.xlu1 %1806 }
 0xc2d   :  { %v1808_v28 = vsub.f32 %v1802_v16, %v1807_v27 }
 0xc2f   :  { %v1809_v29 = vmul.f32 1.442695, %v1808_v28 }
 0xc30   :  { %v1487_v41 = vpop.permute.xlu1 %1486 }
 0xc31   :  { %2571 = vpow2.f32 %v1809_v29 }
 0xc32   :  { %v2568_v23 = vpop.eup %2567  ;;  %2573 = vpow2.f32 %v1644_v38  ;;  %v2001_v38 = vrot.slane %v2991_v5, %v938_v54  ;;  %v2242_v54 = vld [vmem:[%s3177_s5 + $0x70] sm:$0xff] }
 0xc33   :  { %v2570_v30 = vpop.eup %2569  ;;  %v1316_v31 = vsel %vm170_vm2, %v2568_v23, 0.0 }
 0xc34   :  { %1317 = vadd.xlane.f32.xlu0 %v1316_v31  ;;  %v1481_v32 = vsel %vm170_vm2, %v2570_v30, 0.0 }
 0xc35   :  { %1482 = vadd.xlane.f32.xlu1 %v1481_v32  ;;  %v2235_v32 = vld [vmem:[%s3176_s4 + $0x38] sm:$0xff] }
 0xc3e   :  { %v2572_v33 = vpop.eup %2571 }
 0xc3f   :  { %v1811_v34 = vsel %vm170_vm2, %v2572_v33, 0.0  ;;  %v2574_v39 = vpop.eup %2573 }
 0xc40   :  { %1812 = vadd.xlane.f32.xlu1 %v1811_v34  ;;  %v1646_v40 = vsel %vm170_vm2, %v2574_v39, 0.0 }
 0xc4a   :  { %1321 = vrot.lane.b32.xlu0 %v2996_v52, %s2690_s8 }
 0xc51   :  { %1651 = vrot.lane.b32.xlu1 %v2996_v52, %s2691_s9 }
 0xc69   :  { %1647 = vadd.xlane.f32.xlu0 %v1646_v40 }
 0xc7f   :  { %1816 = vrot.lane.b32.xlu0 %v2996_v52, %s2692_s10 }
 0xcbd   :  { %v1318_v44 = vpop.xlane.xlu0 %1317 }
 0xcbe   :  { %2575 = vrcp.f32 %v1318_v44  ;;  %v1483_v45 = vpop.xlane.xlu1 %1482 }
 0xcbf   :  { %2577 = vrcp.f32 %v1483_v45 }
 0xcc1   :  { %v1322_v46 = vpop.permute.xlu0 %1321 }
 0xcc2   :  { %2449 = vmatpush3.msra.mxu1 %v1322_v46  ;;  %v2243_v46 = vld [vmem:[%s3177_s5 + $0x78] sm:$0xff] }
 0xcc3   :  { %2458 = vmatprep.subr.mxu1 %v2680_v0 }
 0xcc9   :  { %v1813_v48 = vpop.xlane.xlu1 %1812 }
 0xccb   :  { %v2576_v47 = vpop.eup %2575 }
 0xccc   :  { %v1320_v50 = vmul.f32 %v2576_v47, %v2568_v23  ;;  %v2578_v51 = vpop.eup %2577  ;;  %v2240_v47 = vld [vmem:[%s3177_s5 + $0x60] sm:$0xff] }
 0xccd   :  { %v1485_v52 = vmul.f32 %v2578_v51, %v2570_v30  ;;  %v1652_v53 = vpop.permute.xlu1 %1651  ;;  %v2237_v51 = vld [vmem:[%s3177_s5 + $0x48] sm:$0xff] }
 0xcce   :  { %2451 = vmatmul.mubr.msk.f32.vlgmr.msra.gmra.mxu1 %vm170_vm2, %v1320_v50  ;;  %v2238_v50 = vld [vmem:[%s3177_s5 + $0x50] sm:$0xff] }
 0xccf   :  { %2459 = vmatpush3.msra.mxu1 %v1487_v41  ;;  %2460 = vmatprep.mubr.msk.f32.mxu1 %vm2681_vm0, %v2680_v0  ;;  %v2006_v41 = vrot.slane %v2991_v5, %v943_v55  ;;  %v2241_v55 = vld [vmem:[%s3177_s5 + $0x68] sm:$0xff] }
 0xcd0   :  { %2468 = vmatprep.subr.mxu1 %v2680_v0 }
 0xcd2   :  { %2461 = vmatmul.mubr.msk.f32.vlgmr.msra.gmra.mxu1 %vm170_vm2, %v1485_v52  ;;  %v2236_v52 = vld [vmem:[%s3177_s5 + $0x40] sm:$0xff] }
 0xcd3   :  { %2469 = vmatpush3.msra.mxu1 %v1652_v53  ;;  %2470 = vmatprep.mubr.msk.f32.mxu1 %vm2681_vm0, %v2680_v0  ;;  %v2011_v53 = vrot.slane %v2991_v5, %v948_v11 }
 0xcd4   :  { %2478 = vmatprep.subr.mxu1 %v2680_v0 }
 0xcf2   :  { %v1648_v8 = vpop.xlane.xlu0 %1647 }
 0xcf3   :  { %2579 = vrcp.f32 %v1648_v8 }
 0xcf4   :  { %2581 = vrcp.f32 %v1813_v48  ;;  %v2239_v48 = vld [vmem:[%s3177_s5 + $0x58] sm:$0xff]  ;;  %s2695_s5 = smov [#allocation8]  }
 0xcf5   :  { %s2198_s25 = sshll.u32 %s2695_s5, 4  ;;  %s2199_s25 = int_to_ptr.vmem [resolvable:$true] %s2198_s25 }
 0xcf6   :  { %v1817_v58 = vpop.permute.xlu0 %1816  ;;  %s2649_s26 = scalar_lea.vmem %s2199_s25, 128  ;;  %p2654_p2 = scmp.lt.s32.totalorder %s2199_s25, %s2199_s25 }
 0xcf7   :  { %p2650_p1 = scmp.ne.s32.totalorder %s2199_s25, %s2649_s26  ;;  %p2655_p3 = scmp.lt.s32.totalorder %s2649_s26, %s2649_s26 }
 0xcf9   :  { %p2656_p4 = por %p2655_p3, %p2654_p2 }
 0xcfb   :  { %p2657_p5 = pnand %p2656_p4, %p2650_p1 }
 0xd00   :  { %v2580_v9 = vpop.eup %2579 }
 0xd01   :  { %v1650_v56 = vmul.f32 %v2580_v9, %v2574_v39  ;;  %v2582_v57 = vpop.eup %2581 }
 0xd02   :  { %v1815_v59 = vmul.f32 %v2582_v57, %v2572_v33  ;;  %v2232_v33 = vld [vmem:[%s3176_s4 + $0x20] sm:$0xff] }
 0xd03   :  { %2471 = vmatmul.mubr.msk.f32.vlgmr.msra.gmra.mxu1 %vm170_vm2, %v1650_v56 }
 0xd04   :  { %2479 = vmatpush3.msra.mxu1 %v1817_v58  ;;  %2480 = vmatprep.mubr.msk.f32.mxu1 %vm2681_vm0, %v2680_v0 }
 0xd05   :  { %2494 = vmatprep.subr.mxu1 %v2680_v0 }
 0xd07   :  { %2481 = vmatmul.mubr.msk.f32.vlgmr.msra.gmra.mxu1 %vm170_vm2, %v1815_v59 }
 0xd08   :  { %2502 = vmatprep.mubr.msk.f32.mxu1 %vm2681_vm0, %v2680_v0  ;;  %2495 = vmatpush3.msra.mxu1 %v2235_v32 }
 0xd09   :  { %2496 = vmatprep.subr.mxu1 %v2680_v0 }
 0xd0a   :  { %2497 = vmatpush3.msra.mxu1 %v2234_v36 }
 0xd0b   :  { %2498 = vmatprep.subr.mxu1 %v2680_v0 }
 0xd8e   :  { %v1393_v61 = vpop.f32.mrf.mxu1 }
 0xd90   :  { %v2452_v62 = vpop.f32.mrf.mxu1 }
 0xd92   :  { %v1558_v63 = vpop.f32.mrf.mxu1 }
 0xd93   :  { %1893 = vrot.lane.b32.xlu1 %v1558_v63, %s2679_s14 }
 0xd94   :  { %v2462_v1 = vpop.f32.mrf.mxu1 }
 0xdc3   :  { %v1723_v6 = vpop.f32.mrf.mxu1 }
 0xdc4   :  { %1897 = vrot.lane.b32.xlu0 %v1723_v6, %s2693_s6 }
 0xdc5   :  { %v2472_v10 = vpop.f32.mrf.mxu1 }
 0xdc7   :  { %v1888_v12 = vpop.f32.mrf.mxu1 }
 0xdc8   :  { %1901 = vrot.lane.b32.xlu1 %v1888_v12, %s2694_s18 }
 0xdc9   :  { %v2482_v13 = vpop.f32.mrf.mxu1 }
 0xe05   :  { %v1894_v14 = vpop.permute.xlu1 %1893 }
 0xe06   :  { %v1904_v16 = vsel %vm170_vm2, %v1393_v61, %v1894_v14 }
 0xe36   :  { %v1898_v15 = vpop.permute.xlu0 %1897 }
 0xe37   :  { %v1905_v17 = vsel %vm840_vm3, %v1904_v16, %v1898_v15 }
 0xe3a   :  { %v1902_v18 = vpop.permute.xlu1 %1901 }
 0xe3b   :  { %v1906_v19 = vsel %vm842_vm4, %v1905_v17, %v1902_v18  ;;  %v2189_v18 = vrot.slane %v2991_v5, %v1127_v43 }
 0xe3c   :  { %2492 = vmatmul.mubr.msk.f32.vlgmr.msra.gmra.mxu0 %vm93_vm1, %v1906_v19 }
 0xe3d   :  { %2521 = vmatprep.mubr.msk.f32.mxu0 %vm2681_vm0, %v2680_v0  ;;  %2506 = vmatpush3.msra.mxu0 %v2243_v46 }
 0xe3e   :  { %2507 = vmatprep.subr.mxu0 %v2680_v0 }
 0xe3f   :  { %2508 = vmatpush3.msra.mxu0 %v2242_v54 }
 0xe40   :  { %2509 = vmatprep.subr.mxu0 %v2680_v0 }
 0xe41   :  { %2510 = vmatpush3.msra.mxu0 %v2241_v55 }
 0xe42   :  { %2511 = vmatprep.subr.mxu0 %v2680_v0 }
 0xe43   :  { %2512 = vmatpush3.msra.mxu0 %v2240_v47 }
 0xe44   :  { %2513 = vmatprep.subr.mxu0 %v2680_v0 }
 0xe45   :  { %2514 = vmatpush3.msra.mxu0 %v2239_v48 }
 0xe46   :  { %2515 = vmatprep.subr.mxu0 %v2680_v0 }
 0xe47   :  { %2516 = vmatpush3.msra.mxu0 %v2238_v50 }
 0xe48   :  { %2517 = vmatprep.subr.mxu0 %v2680_v0 }
 0xe49   :  { %2518 = vmatpush3.msra.mxu0 %v2237_v51 }
 0xe4a   :  { %2519 = vmatprep.subr.mxu0 %v2680_v0 }
 0xe4b   :  { %2520 = vmatpush3.msra.mxu0 %v2236_v52 }
 0xefc   :  { %v1980_v22 = vpop.f32.mrf.mxu0 }
 0xefd   :  { %v1981_v24 = vadd.f32 %v1980_v22, %v1910_v20 }
 0xefe   :  { %v2493_v25 = vpop.f32.mrf.mxu0 }
 0xeff   :  { %v1984_v26 = vadd.f32 %v1981_v24, %v2985_v49  ;;  %v2233_v49 = vld [vmem:[%s3176_s4 + $0x28] sm:$0xff] }
 0xf00   :  { %2499 = vmatpush3.msra.mxu1 %v2233_v49 }
 0xf01   :  { %v1985_v27 = vsel %vm93_vm1, %v1984_v26, 0.0  ;;  %2500 = vmatprep.subr.mxu1 %v2680_v0  ;;  %v2093_v0 = vrot.slane %v2991_v5, %v1030_v21  ;;  %v2184_v21 = vrot.slane %v2991_v5, %v1122_v42 }
 0xf02   :  { %1986 = vadd.xlane.f32.xlu0 %v1985_v27  ;;  %2501 = vmatpush3.msra.mxu1 %v2232_v33 }
 0xf8b   :  { %v1987_v28 = vpop.xlane.xlu0 %1986 }
 0xf8c   :  { %v1988_v29 = vmul.f32 0.03125, %v1987_v28 }
 0xf8e   :  { %v1989_v23 = vsub.f32 %v1984_v26, %v1988_v29 }
 0xf90   :  { %v1990_v30 = vmul.f32 %v1989_v23, %v1989_v23 }
 0xf92   :  { %v1991_v31 = vsel %vm93_vm1, %v1990_v30, 0.0 }
 0xf93   :  { %1992 = vadd.xlane.f32.xlu1 %v1991_v31 }
0x101c   :  { %v1993_v34 = vpop.xlane.xlu1 %1992 }
0x101d   :  { %v1994_v35 = vmul.f32 0.03125, %v1993_v34 }
0x101f   :  { %v1995_v37 = vadd.f32 1e-12, %v1994_v35 }
0x1021   :  { %2583 = vrsqrt.f32 %v1995_v37 }
0x102e   :  { %v2584_v39 = vpop.eup %2583 }
0x102f   :  { %v1997_v40 = vmul.f32 %v2584_v39, %v1989_v23 }
0x1031   :  { %v2002_v44 = vmul.f32 %v2001_v38, %v1997_v40 }
0x1033   :  { %v2007_v45 = vadd.f32 %v2006_v41, %v2002_v44 }
0x1035   :  { %2503 = vmatmul.mubr.msk.f32.vlgmr.msra.gmra.mxu1 %vm93_vm1, %v2007_v45 }
0x10f5   :  { %v2081_v8 = vpop.f32.mrf.mxu1 }
0x10f6   :  { %v2082_v9 = vadd.f32 %v2081_v8, %v2011_v53 }
0x10f7   :  { %v2504_v56 = vpop.f32.mrf.mxu1 }
0x10f8   :  { %v2086_v57 = vmul.f32 0.70710677, %v2082_v9  ;;  %v2085_v59 = vmul.f32 0.5, %v2082_v9 }
0x10fa   :  { %2585 = verf.f32 %v2086_v57 }
0x1107   :  { %v2586_v58 = vpop.eup %2585 }
0x1108   :  { %v2088_v60 = vadd.f32 1.0, %v2586_v58 }
0x110a   :  { %v2089_v61 = vmul.f32 %v2088_v60, %v2085_v59 }
0x110c   :  { %2522 = vmatmul.mubr.msk.f32.vlgmr.msra.gmra.mxu0 %vm1032_vm5, %v2089_v61 }
0x11cc   :  { %v2163_v62 = vpop.f32.mrf.mxu0 }
0x11cd   :  { %v2164_v63 = vadd.f32 %v2163_v62, %v2093_v0 }
0x11ce   :  { %v2523_v1 = vpop.f32.mrf.mxu0 }
0x11cf   :  { %v2167_v2 = vadd.f32 %v2164_v63, %v2007_v45 }
0x11d1   :  { %v2168_v11 = vsel %vm93_vm1, %v2167_v2, 0.0 }
0x11d2   :  { %2169 = vadd.xlane.f32.xlu0 %v2168_v11 }
0x125b   :  { %v2170_v3 = vpop.xlane.xlu0 %2169 }
0x125c   :  { %v2171_v4 = vmul.f32 0.03125, %v2170_v3 }
0x125e   :  { %v2172_v6 = vsub.f32 %v2167_v2, %v2171_v4 }
0x1260   :  { %v2173_v10 = vmul.f32 %v2172_v6, %v2172_v6 }
0x1262   :  { %v2174_v12 = vsel %vm93_vm1, %v2173_v10, 0.0 }
0x1263   :  { %2175 = vadd.xlane.f32.xlu0 %v2174_v12 }
0x12ec   :  { %v2176_v13 = vpop.xlane.xlu0 %2175 }
0x12ed   :  { %v2177_v14 = vmul.f32 0.03125, %v2176_v13 }
0x12ef   :  { %v2178_v15 = vadd.f32 1e-12, %v2177_v14 }
0x12f1   :  { %2587 = vrsqrt.f32 %v2178_v15 }
0x12fe   :  { %v2588_v16 = vpop.eup %2587 }
0x12ff   :  { %v2180_v17 = vmul.f32 %v2588_v16, %v2172_v6 }
0x1301   :  { %v2185_v19 = vmul.f32 %v2184_v21, %v2180_v17 }
0x1303   :  { %v2190_v20 = vadd.f32 %v2189_v18, %v2185_v19 }
0x1305   :  { %2191 = vst.msk [vmem:[#allocation8] sm:$0xff] %vm93_vm1, %v2190_v20 }
0x1306   :  { %2660 = shalt.err (!%p2657_p5)
}
0x1307   :  { %2201 = dma.vmem_to_hbm [thread:$0]  %s2199_s25, 128, %s3179_s7, [#allocation4]  }
0x1308   :  { %2673 = dma.done.wait [#allocation4], 128  }
0x1309   :  { %2674 = vsyncadd [#allocation4], 4294967168 }
0x130a   :  { %2205 = vsyncpa [#allocation3], 1 }
0x130b   :  { %2206 = vsyncpa [#allocation6], 1 }
0x130c   :  { %2207 = vsyncpa [#allocation4], 1 }

</bundles_post_ra>
